<compile_context>
chip_gen: v5e
topology: v5e:2x2
jax: 0.10.0
libtpu: 0.0.40
codegen_flags: <defaults>
</compile_context>

<pallas_src>
import jax
import jax.numpy as jnp
from jax.experimental import pallas as pl
from jax.experimental.pallas import tpu as pltpu

IN_F = 4     # input features
H1 = 16      # hidden 1
H2 = 16      # hidden 2
C_PAD = 4    # classifier head padded from 3 -> 4 for a 128-lane-dense output tile
K_PACK = 32  # samples packed per row (4*32 = 128 lanes on the input)
ROW = 8 * K_PACK  # 256: batch granularity keeping the sublane dim a multiple of 8


def _mlp_kernel(w1_ref, w2_ref, w3_ref, b_ref, x_ref, o_ref):
    """Fused block-diagonal 3-layer MLP on one batch tile.

    w1_ref: [IN_F*K, H1*K]  bf16   (kron(I_K, W1.T))
    w2_ref: [H1*K,  H2*K]   bf16
    w3_ref: [H2*K,  C_PAD*K] bf16
    b_ref:  [8, H1*K]       f32    (row 0 = b1 tiled, row 1 = b2 tiled, row 2[:C_PAD*K] = b3 tiled)
    x_ref:  [TM, IN_F*K]    f32    (TM = tile_batch / K, lane-dense)
    o_ref:  [TM, C_PAD*K]   f32
    """
    # bf16 operands, f32 accumulation (deliberate precision choice).
    x = x_ref[...].astype(w1_ref.dtype)

    h = jnp.dot(x, w1_ref[...], preferred_element_type=jnp.float32)
    h = jnp.maximum(h + b_ref[0:1, :], 0.0)                       # Linear(4,16)+ReLU

    h = jnp.dot(h.astype(w2_ref.dtype), w2_ref[...],
                preferred_element_type=jnp.float32)
    h = jnp.maximum(h + b_ref[1:2, :], 0.0)                       # Linear(16,16)+ReLU

    out = jnp.dot(h.astype(w3_ref.dtype), w3_ref[...],
                  preferred_element_type=jnp.float32)
    out = out + b_ref[2:3, 0:C_PAD * K_PACK]                      # Linear(16,C)

    o_ref[...] = out.astype(o_ref.dtype)


def pack_params(params, *, num_classes=3, weight_dtype=jnp.bfloat16):
    """Pack torch-layout params into block-diagonal MXU-friendly slabs.

    Do this ONCE (at init / outside the hot loop) — not per forward call.
    """
    w1, b1, w2, b2, w3, b3 = params
    k = K_PACK

    # Pad the head to C_PAD outputs so the output tile is exactly 128 lanes.
    w3p = jnp.zeros((C_PAD, H2), jnp.float32).at[:num_classes].set(w3.astype(jnp.float32))
    b3p = jnp.zeros((C_PAD,), jnp.float32).at[:num_classes].set(b3.astype(jnp.float32))

    eye = jnp.eye(k, dtype=jnp.float32)
    w1_bd = jnp.kron(eye, w1.astype(jnp.float32).T).astype(weight_dtype)  # [4k, 16k]
    w2_bd = jnp.kron(eye, w2.astype(jnp.float32).T).astype(weight_dtype)  # [16k, 16k]
    w3_bd = jnp.kron(eye, w3p.T).astype(weight_dtype)                     # [16k, 4k]

    bias = jnp.zeros((8, H1 * k), jnp.float32)                            # sublane-aligned
    bias = bias.at[0, :].set(jnp.tile(b1.astype(jnp.float32), k))
    bias = bias.at[1, :].set(jnp.tile(b2.astype(jnp.float32), k))
    bias = bias.at[2, :C_PAD * k].set(jnp.tile(b3p, k))

    return (w1_bd, w2_bd, w3_bd, bias, num_classes)


def net_forward(x, packed, *, tb=32768):
    """Fused MLP forward. x: [B, 4] float. Returns [B, num_classes] float32.

    tb = batch-tile size in samples (large to amortize per-grid-step overhead;
    clamped / rounded to a multiple of 256 and capped so the grid has >= 2
    steps when possible, so v7x's two TensorCores both get work).
    """
    w1_bd, w2_bd, w3_bd, bias, num_classes = packed
    B = x.shape[0]
    assert x.shape[1] == IN_F
    k = K_PACK

    # Minimal padded batch (multiple of ROW = 256 samples).
    b_pad = max(ROW, ((B + ROW - 1) // ROW) * ROW)

    # Tile size: rounded to a multiple of ROW, no bigger than the data,
    # split into >= 2 grid steps if the batch allows (v7x dual-TC).
    tb = max(ROW, (min(tb, b_pad) // ROW) * ROW)
    if b_pad // tb < 2 and b_pad >= 2 * ROW:
        tb = max(ROW, (b_pad // (2 * ROW)) * ROW)
    b_pad = ((b_pad + tb - 1) // tb) * tb

    xf = x.astype(jnp.float32)
    if b_pad != B:
        xf = jnp.pad(xf, ((0, b_pad - B), (0, 0)))
    # Pure reshape (row-major, layout preserving): no transpose, no extra HBM pass.
    x_packed = xf.reshape(b_pad // k, IN_F * k)

    tm = tb // k
    grid = (b_pad // tb,)

    out_packed = pl.pallas_call(
        _mlp_kernel,
        out_shape=jax.ShapeDtypeStruct((b_pad // k, C_PAD * k), jnp.float32),
        grid=grid,
        in_specs=[
            # Weights / bias: constant index_map -> fetched once, VMEM-resident.
            pl.BlockSpec(w1_bd.shape, lambda i: (0, 0)),
            pl.BlockSpec(w2_bd.shape, lambda i: (0, 0)),
            pl.BlockSpec(w3_bd.shape, lambda i: (0, 0)),
            pl.BlockSpec(bias.shape, lambda i: (0, 0)),
            # x tile: [tm, 128], lane-dense, double-buffered across the grid.
            pl.BlockSpec((tm, IN_F * k), lambda i: (i, 0)),
        ],
        out_specs=pl.BlockSpec((tm, C_PAD * k), lambda i: (i, 0)),
        compiler_params=pltpu.CompilerParams(
            dimension_semantics=("parallel",)),
    )(w1_bd, w2_bd, w3_bd, bias, x_packed)

    # Pure reshape back to [B_pad, C_PAD], then drop padding (batch + head pad).
    out = out_packed.reshape(b_pad, C_PAD)
    return out[:B, :num_classes]


def init_params(key, num_classes=3):
    """Deterministic torch.nn.Linear-style init. Weights stored [out, in]."""
    def linear_init(k, fan_in, fan_out):
        k1, k2 = jax.random.split(k)
        bound = 1.0 / jnp.sqrt(fan_in)
        w = jax.random.uniform(k1, (fan_out, fan_in), jnp.float32, -bound, bound)
        b = jax.random.uniform(k2, (fan_out,), jnp.float32, -bound, bound)
        return w, b

    k1, k2, k3 = jax.random.split(key, 3)
    w1, b1 = linear_init(k1, IN_F, H1)
    w2, b2 = linear_init(k2, H1, H2)
    w3, b3 = linear_init(k3, H2, num_classes)
    return (w1, b1, w2, b2, w3, b3)


def reference_forward(x, params):
    """Plain-JAX f32 reference of the same forward pass (dropout = identity)."""
    w1, b1, w2, b2, w3, b3 = params
    h1 = jnp.maximum(x @ w1.T + b1, 0.0)
    h2 = jnp.maximum(h1 @ w2.T + b2, 0.0)
    return h2 @ w3.T + b3


if __name__ == "__main__":
    key = jax.random.PRNGKey(0)
    k_params, k_x = jax.random.split(key)

    params = init_params(k_params, num_classes=3)
    packed = pack_params(params, num_classes=3)      # packed ONCE, reused per call

    x = jax.random.normal(k_x, (8, 4), dtype=jnp.float32)  # batch=8, features=4

    out = jax.block_until_ready(net_forward(x, packed))

    ref = reference_forward(x, params)
    assert out.shape == (8, 3), out.shape
    # bf16 matmul operands with f32 accumulation -> compare with loosened tolerance.
    assert jnp.allclose(out, ref, atol=2e-2, rtol=2e-2), "mismatch vs reference"

    print("KERNEL_OK")
</pallas_src>

<mosaic_0001>
module attributes {stable_mosaic.version = 11 : i64} {
  func.func @_mlp_kernel(%arg0: i32, %arg1: memref<128x512xbf16, #tpu.memory_space<vmem>>, %arg2: memref<512x512xbf16, #tpu.memory_space<vmem>>, %arg3: memref<512x128xbf16, #tpu.memory_space<vmem>>, %arg4: memref<8x512xf32, #tpu.memory_space<vmem>>, %arg5: memref<8x128xf32, #tpu.memory_space<vmem>>, %arg6: memref<8x128xf32, #tpu.memory_space<vmem>>) attributes {dimension_semantics = [#tpu.dimension_semantics<parallel>], iteration_bounds = array<i64: 1>, scalar_prefetch = 0 : i64, scratch_operands = 0 : i64, tpu.core_type = #tpu.core_type<tc>, window_params = [{pipeline_mode = #tpu.pipeline_mode<synchronous>, transform_indices = @transform_0, window_bounds = array<i64: 128, 512>}, {pipeline_mode = #tpu.pipeline_mode<synchronous>, transform_indices = @transform_1, window_bounds = array<i64: 512, 512>}, {pipeline_mode = #tpu.pipeline_mode<synchronous>, transform_indices = @transform_2, window_bounds = array<i64: 512, 128>}, {pipeline_mode = #tpu.pipeline_mode<synchronous>, transform_indices = @transform_3, window_bounds = array<i64: 8, 512>}, {transform_indices = @transform_4, window_bounds = array<i64: 8, 128>}, {transform_indices = @transform_5, window_bounds = array<i64: 8, 128>}]} {
    %c0 = arith.constant 0 : index
    %c0_0 = arith.constant 0 : index
    %0 = vector.load %arg5[%c0, %c0_0] : memref<8x128xf32, #tpu.memory_space<vmem>>, vector<8x128xf32>
    %1 = arith.truncf %0 : vector<8x128xf32> to vector<8x128xbf16>
    %c0_1 = arith.constant 0 : index
    %c0_2 = arith.constant 0 : index
    %2 = vector.load %arg1[%c0_1, %c0_2] : memref<128x512xbf16, #tpu.memory_space<vmem>>, vector<128x512xbf16>
    %cst = arith.constant dense<0.000000e+00> : vector<8x512xf32>
    %3 = tpu.matmul %1, %2, %cst {dimension_numbers = #tpu.dot_dimension_numbers<[1], [0], [0], [1], [0, 0, 1, 1], [], []>} : vector<8x128xbf16>, vector<128x512xbf16>, vector<8x512xf32> -> vector<8x512xf32>
    %c0_3 = arith.constant 0 : index
    %c0_4 = arith.constant 0 : index
    %4 = vector.load %arg4[%c0_3, %c0_4] : memref<8x512xf32, #tpu.memory_space<vmem>>, vector<1x512xf32>
    %5 = vector.broadcast %4 : vector<1x512xf32> to vector<8x512xf32>
    %6 = arith.addf %3, %5 : vector<8x512xf32>
    %cst_5 = arith.constant 0.000000e+00 : f32
    %7 = vector.broadcast %cst_5 : f32 to vector<8x512xf32>
    %8 = arith.maximumf %6, %7 : vector<8x512xf32>
    %9 = arith.truncf %8 : vector<8x512xf32> to vector<8x512xbf16>
    %c0_6 = arith.constant 0 : index
    %c0_7 = arith.constant 0 : index
    %10 = vector.load %arg2[%c0_6, %c0_7] : memref<512x512xbf16, #tpu.memory_space<vmem>>, vector<512x512xbf16>
    %cst_8 = arith.constant dense<0.000000e+00> : vector<8x512xf32>
    %11 = tpu.matmul %9, %10, %cst_8 {dimension_numbers = #tpu.dot_dimension_numbers<[1], [0], [0], [1], [0, 0, 1, 1], [], []>} : vector<8x512xbf16>, vector<512x512xbf16>, vector<8x512xf32> -> vector<8x512xf32>
    %c1 = arith.constant 1 : index
    %c0_9 = arith.constant 0 : index
    %12 = vector.load %arg4[%c1, %c0_9] : memref<8x512xf32, #tpu.memory_space<vmem>>, vector<1x512xf32>
    %13 = vector.broadcast %12 : vector<1x512xf32> to vector<8x512xf32>
    %14 = arith.addf %11, %13 : vector<8x512xf32>
    %cst_10 = arith.constant 0.000000e+00 : f32
    %15 = vector.broadcast %cst_10 : f32 to vector<8x512xf32>
    %16 = arith.maximumf %14, %15 : vector<8x512xf32>
    %17 = arith.truncf %16 : vector<8x512xf32> to vector<8x512xbf16>
    %c0_11 = arith.constant 0 : index
    %c0_12 = arith.constant 0 : index
    %18 = vector.load %arg3[%c0_11, %c0_12] : memref<512x128xbf16, #tpu.memory_space<vmem>>, vector<512x128xbf16>
    %cst_13 = arith.constant dense<0.000000e+00> : vector<8x128xf32>
    %19 = tpu.matmul %17, %18, %cst_13 {dimension_numbers = #tpu.dot_dimension_numbers<[1], [0], [0], [1], [0, 0, 1, 1], [], []>} : vector<8x512xbf16>, vector<512x128xbf16>, vector<8x128xf32> -> vector<8x128xf32>
    %c2 = arith.constant 2 : index
    %c0_14 = arith.constant 0 : index
    %20 = vector.load %arg4[%c2, %c0_14] : memref<8x512xf32, #tpu.memory_space<vmem>>, vector<1x128xf32>
    %21 = vector.broadcast %20 : vector<1x128xf32> to vector<8x128xf32>
    %22 = arith.addf %19, %21 : vector<8x128xf32>
    %c0_15 = arith.constant 0 : index
    %c0_16 = arith.constant 0 : index
    %23 = vector.load %arg6[%c0_15, %c0_16] : memref<8x128xf32, #tpu.memory_space<vmem>>, vector<8x128xf32>
    tpu.vector_store %arg6[%c0_15, %c0_16], %22 {strides = array<i32>} : memref<8x128xf32, #tpu.memory_space<vmem>>, vector<8x128xf32>,
    return
  }
  func.func @transform_0(%arg0: i32) -> (i32, i32) {
    %c0_i32 = arith.constant 0 : i32
    %c0_i32_0 = arith.constant 0 : i32
    %c0_i32_1 = arith.constant 0 : i32
    return %c0_i32, %c0_i32_0 : i32, i32
  }
  func.func @transform_1(%arg0: i32) -> (i32, i32) {
    %c0_i32 = arith.constant 0 : i32
    %c0_i32_0 = arith.constant 0 : i32
    %c0_i32_1 = arith.constant 0 : i32
    return %c0_i32, %c0_i32_0 : i32, i32
  }
  func.func @transform_2(%arg0: i32) -> (i32, i32) {
    %c0_i32 = arith.constant 0 : i32
    %c0_i32_0 = arith.constant 0 : i32
    %c0_i32_1 = arith.constant 0 : i32
    return %c0_i32, %c0_i32_0 : i32, i32
  }
  func.func @transform_3(%arg0: i32) -> (i32, i32) {
    %c0_i32 = arith.constant 0 : i32
    %c0_i32_0 = arith.constant 0 : i32
    %c0_i32_1 = arith.constant 0 : i32
    return %c0_i32, %c0_i32_0 : i32, i32
  }
  func.func @transform_4(%arg0: i32) -> (i32, i32) {
    %c0_i32 = arith.constant 0 : i32
    %c0_i32_0 = arith.constant 0 : i32
    return %arg0, %c0_i32 : i32, i32
  }
  func.func @transform_5(%arg0: i32) -> (i32, i32) {
    %c0_i32 = arith.constant 0 : i32
    %c0_i32_0 = arith.constant 0 : i32
    return %arg0, %c0_i32 : i32, i32
  }
}

</mosaic_0001>

<bundles_post_ra>
// kernel: tpu_custom_call.1
= control target key start
LH: loop header
LB: loop body
LE: loop exit
PB: predicated region body
PF: predicated region fallthrough
CT: control target
= control target key end

     0   :  { %10 = vsyncpa [#allocation3], 0  ;;  %s2893_s0 = inlined_call_operand.hbm [shape: bf16[128,512], index: 0, kind: input, shape index: {}]   ;;  %s2894_s1 = inlined_call_operand.hbm [shape: bf16[512,512], index: 1, kind: input, shape index: {}]   ;;  %s2895_s2 = inlined_call_operand.hbm [shape: bf16[512,128], index: 2, kind: input, shape index: {}]   ;;  %s2896_s3 = inlined_call_operand.hbm [shape: f32[8,512], index: 3, kind: input, shape index: {}]   ;;  %s2897_s4 = inlined_call_operand.hbm [shape: f32[8,128], index: 4, kind: input, shape index: {}]   ;;  %s2898_s5 = inlined_call_operand.hbm [shape: f32[8,128], index: 5, kind: output, shape index: {}]  }
   0x1   :  { %11 = vsyncpa [#allocation6], 0 }
   0x2   :  { %12 = vsyncpa [#allocation9], 0 }
   0x3   :  { %13 = vsyncpa [#allocation4], 0  ;;  %s31_s20 = sshll.u32 %s2894_s1, 4  ;;  %s2805_s21 = smov [#allocation5]   ;;  %s32_s20 = int_to_ptr.hbm [resolvable:$true] %s31_s20 }
   0x4   :  { %s33_s22 = sshll.u32 %s2805_s21, 4  ;;  %s58_s25 = sshll.u32 %s2896_s3, 4  ;;  %s34_s22 = int_to_ptr.vmem [resolvable:$true] %s33_s22  ;;  %s59_s25 = int_to_ptr.hbm [resolvable:$true] %s58_s25 }
   0x5   :  { %s2806_s26 = smov 256   ;;  %s2807_s27 = smov 16  }
   0x6   :  { %39 = dma.hbm_to_vmem [thread:$0]  %s32_s20, 16384, %s34_s22, [#allocation6], %s2806_s26, %s2806_s26, %s2807_s27  }
   0x7   :  { %s2808_s28 = smov [#allocation8]   ;;  %s18_s7 = sshll.u32 %s2893_s0, 4  ;;  %s19_s7 = int_to_ptr.hbm [resolvable:$true] %s18_s7 }
   0x8   :  { %s60_s29 = sshll.u32 %s2808_s28, 4  ;;  %s44_s9 = sshll.u32 %s2895_s2, 4  ;;  %s61_s29 = int_to_ptr.vmem [resolvable:$true] %s60_s29  ;;  %s45_s9 = int_to_ptr.hbm [resolvable:$true] %s44_s9 }
   0x9   :  { %63 = dma.hbm_to_vmem [thread:$0]  %s59_s25, 512, %s61_s29, [#allocation9]  }
   0xa   :  { %s2809_s10 = smov [#allocation2]   ;;  %s2810_s3 = smov [#allocation7]  }
   0xb   :  { %s20_s11 = sshll.u32 %s2809_s10, 4  ;;  %s46_s12 = sshll.u32 %s2810_s3, 4  ;;  %s21_s11 = int_to_ptr.vmem [resolvable:$true] %s20_s11  ;;  %s47_s12 = int_to_ptr.vmem [resolvable:$true] %s46_s12 }
   0xc   :  { %26 = dma.hbm_to_vmem [thread:$0]  %s19_s7, 4096, %s21_s11, [#allocation3], %s2806_s26, %s2806_s26, %s2807_s27  }
   0xd   :  { %s2811_s13 = smov 64   ;;  %s2812_s14 = smov 4  }
   0xe   :  { %52 = dma.hbm_to_vmem [thread:$0]  %s45_s9, 4096, %s47_s12, [#allocation6], %s2811_s13, %s2811_s13, %s2812_s14  }
   0xf   :  { %s69_s16 = sshll.u32 %s2897_s4, 4  ;;  %s2813_s17 = smov [#allocation10]   ;;  %s70_s16 = int_to_ptr.hbm [resolvable:$true] %s69_s16 }
  0x10   :  { %s71_s18 = sshll.u32 %s2813_s17, 4  ;;  %s72_s18 = int_to_ptr.vmem [resolvable:$true] %s71_s18 }
  0x11   :  { %74 = dma.hbm_to_vmem [thread:$0]  %s70_s16, 128, %s72_s18, [#allocation9]  }
  0x12   :  { %2797 = dma.done.wait [#allocation3], 4096  }
  0x13   :  { %2798 = vsyncadd [#allocation3], 4294963200 }
  0x14   :  { %2799 = dma.done.wait [#allocation6], 20480  }
  0x15   :  { %2800 = vsyncadd [#allocation6], 4294946816 }
  0x16   :  { %2801 = dma.done.wait [#allocation9], 640  }
  0x17   :  { %2802 = vsyncadd [#allocation9], 4294966656  ;;  %v1797_v0 = vld [vmem:[#allocation2 + $0xe0] sm:$0xf]  ;;  %v2481_v1 = vld [vmem:[#allocation2 + $0xec] sm:$0xf0] }
  0x18   :  { %v2479_v2 = vld [vmem:[#allocation2 + $0xe4] sm:$0xf]  ;;  %v1798_v3 = vor.u32 %v2481_v1, %v1797_v0  ;;  %v1799_v4 = vld [vmem:[#allocation2 + $0xf0] sm:$0xf0]  ;;  %v1805_v5 = vld [vmem:[#allocation2 + $0xe8] sm:$0xf] }
  0x19   :  { %v2482_v6 = vld [vmem:[#allocation2 + $0xf4] sm:$0xf0]  ;;  %v1802_v7 = vor.u32 %v2479_v2, %v1799_v4  ;;  %v2480_v9 = vld [vmem:[#allocation2 + $0xec] sm:$0xf]  ;;  %v1807_v10 = vld [vmem:[#allocation2 + $0xf8] sm:$0xf0] }
  0x1a   :  { %v1806_v8 = vor.u32 %v2482_v6, %v1805_v5  ;;  %v1781_v11 = vld [vmem:[#allocation2 + $0xc0] sm:$0xf]  ;;  %299 = vmatpush.bf16.msra.mxu0 %v1798_v3  ;;  %v1810_v12 = vor.u32 %v2480_v9, %v1807_v10  ;;  %v2477_v13 = vld [vmem:[#allocation2 + $0xcc] sm:$0xf0]  ;;  %v2475_v14 = vld [vmem:[#allocation2 + $0xc4] sm:$0xf] }
  0x1b   :  { %v1783_v15 = vld [vmem:[#allocation2 + $0xd0] sm:$0xf0]  ;;  %312 = vmatpush.bf16.msra.mxu1 %v1802_v7  ;;  %v1782_v16 = vor.u32 %v2477_v13, %v1781_v11  ;;  %v1789_v18 = vld [vmem:[#allocation2 + $0xc8] sm:$0xf]  ;;  %v2478_v19 = vld [vmem:[#allocation2 + $0xd4] sm:$0xf0] }
  0x1c   :  { %325 = vmatpush.bf16.msra.mxu2 %v1806_v8  ;;  %v1786_v17 = vor.u32 %v2475_v14, %v1783_v15  ;;  %v2476_v20 = vld [vmem:[#allocation2 + $0xcc] sm:$0xf]  ;;  %338 = vmatpush.bf16.msra.mxu3 %v1810_v12  ;;  %v1790_v21 = vor.u32 %v2478_v19, %v1789_v18  ;;  %v1791_v22 = vld [vmem:[#allocation2 + $0xd8] sm:$0xf0]  ;;  %v1765_v23 = vld [vmem:[#allocation2 + $0xa0] sm:$0xf] }
  0x1d   :  { %v2473_v24 = vld [vmem:[#allocation2 + $0xac] sm:$0xf0]  ;;  %v1794_v25 = vor.u32 %v2476_v20, %v1791_v22  ;;  %v2471_v26 = vld [vmem:[#allocation2 + $0xa4] sm:$0xf]  ;;  %v1767_v27 = vld [vmem:[#allocation2 + $0xb0] sm:$0xf0] }
  0x1e   :  { %v1773_v28 = vld [vmem:[#allocation2 + $0xa8] sm:$0xf]  ;;  %300 = vmatpush.bf16.msra.mxu0 %v1782_v16  ;;  %v1766_v29 = vor.u32 %v2473_v24, %v1765_v23  ;;  %v2474_v30 = vld [vmem:[#allocation2 + $0xb4] sm:$0xf0]  ;;  %v2472_v31 = vld [vmem:[#allocation2 + $0xac] sm:$0xf]  ;;  %v1770_v33 = vor.u32 %v2471_v26, %v1767_v27 }
  0x1f   :  { %v1775_v32 = vld [vmem:[#allocation2 + $0xb8] sm:$0xf0]  ;;  %313 = vmatpush.bf16.msra.mxu1 %v1786_v17  ;;  %v1774_v34 = vor.u32 %v2474_v30, %v1773_v28  ;;  %v1749_v35 = vld [vmem:[#allocation2 + $0x80] sm:$0xf]  ;;  %v2469_v36 = vld [vmem:[#allocation2 + $0x8c] sm:$0xf0] }
  0x20   :  { %326 = vmatpush.bf16.msra.mxu2 %v1790_v21  ;;  %v2467_v37 = vld [vmem:[#allocation2 + $0x84] sm:$0xf]  ;;  %339 = vmatpush.bf16.msra.mxu3 %v1794_v25  ;;  %v1778_v38 = vor.u32 %v2472_v31, %v1775_v32  ;;  %v1751_v39 = vld [vmem:[#allocation2 + $0x90] sm:$0xf0]  ;;  %v1757_v40 = vld [vmem:[#allocation2 + $0x88] sm:$0xf]  ;;  %v1750_v44 = vor.u32 %v2469_v36, %v1749_v35 }
  0x21   :  { %v2470_v41 = vld [vmem:[#allocation2 + $0x94] sm:$0xf0]  ;;  %v2468_v42 = vld [vmem:[#allocation2 + $0x8c] sm:$0xf]  ;;  %v1759_v43 = vld [vmem:[#allocation2 + $0x98] sm:$0xf0]  ;;  %v1754_v45 = vor.u32 %v2467_v37, %v1751_v39 }
  0x22   :  { %301 = vmatpush.bf16.msra.mxu0 %v1766_v29  ;;  %v1758_v46 = vor.u32 %v2470_v41, %v1757_v40  ;;  %v1733_v47 = vld [vmem:[#allocation2 + $0x60] sm:$0xf]  ;;  %v2465_v48 = vld [vmem:[#allocation2 + $0x6c] sm:$0xf0]  ;;  %v2463_v49 = vld [vmem:[#allocation2 + $0x64] sm:$0xf]  ;;  %v1762_v50 = vor.u32 %v2468_v42, %v1759_v43 }
  0x23   :  { %314 = vmatpush.bf16.msra.mxu1 %v1770_v33  ;;  %v1735_v51 = vld [vmem:[#allocation2 + $0x70] sm:$0xf0]  ;;  %v1741_v52 = vld [vmem:[#allocation2 + $0x68] sm:$0xf]  ;;  %v2466_v53 = vld [vmem:[#allocation2 + $0x74] sm:$0xf0]  ;;  %v1734_v56 = vor.u32 %v2465_v48, %v1733_v47 }
  0x24   :  { %327 = vmatpush.bf16.msra.mxu2 %v1774_v34  ;;  %340 = vmatpush.bf16.msra.mxu3 %v1778_v38  ;;  %v2464_v54 = vld [vmem:[#allocation2 + $0x6c] sm:$0xf]  ;;  %v1743_v55 = vld [vmem:[#allocation2 + $0x78] sm:$0xf0]  ;;  %v1738_v57 = vor.u32 %v2463_v49, %v1735_v51  ;;  %v1742_v58 = vor.u32 %v2466_v53, %v1741_v52  ;;  %v1717_v59 = vld [vmem:[#allocation2 + $0x40] sm:$0xf] }
  0x25   :  { %v2461_v60 = vld [vmem:[#allocation2 + $0x4c] sm:$0xf0]  ;;  %v2459_v61 = vld [vmem:[#allocation2 + $0x44] sm:$0xf]  ;;  %v1746_v62 = vor.u32 %v2464_v54, %v1743_v55  ;;  %v1719_v63 = vld [vmem:[#allocation2 + $0x50] sm:$0xf0] }
  0x26   :  { %302 = vmatpush.bf16.msra.mxu0 %v1750_v44  ;;  %v1725_v0 = vld [vmem:[#allocation2 + $0x48] sm:$0xf]  ;;  %v2462_v1 = vld [vmem:[#allocation2 + $0x54] sm:$0xf0]  ;;  %v2460_v2 = vld [vmem:[#allocation2 + $0x4c] sm:$0xf]  ;;  %v1718_v4 = vor.u32 %v2461_v60, %v1717_v59  ;;  %v1722_v5 = vor.u32 %v2459_v61, %v1719_v63 }
  0x27   :  { %315 = vmatpush.bf16.msra.mxu1 %v1754_v45  ;;  %v1727_v3 = vld [vmem:[#allocation2 + $0x58] sm:$0xf0]  ;;  %v1726_v6 = vor.u32 %v2462_v1, %v1725_v0  ;;  %v1701_v7 = vld [vmem:[#allocation2 + $0x20] sm:$0xf]  ;;  %v2457_v8 = vld [vmem:[#allocation2 + $0x2c] sm:$0xf0] }
  0x28   :  { %328 = vmatpush.bf16.msra.mxu2 %v1758_v46  ;;  %341 = vmatpush.bf16.msra.mxu3 %v1762_v50  ;;  %v2455_v9 = vld [vmem:[#allocation2 + $0x24] sm:$0xf]  ;;  %v1730_v10 = vor.u32 %v2460_v2, %v1727_v3  ;;  %v1703_v11 = vld [vmem:[#allocation2 + $0x30] sm:$0xf0]  ;;  %v1709_v12 = vld [vmem:[#allocation2 + $0x28] sm:$0xf]  ;;  %v1702_v16 = vor.u32 %v2457_v8, %v1701_v7 }
  0x29   :  { %v2458_v13 = vld [vmem:[#allocation2 + $0x34] sm:$0xf0]  ;;  %v2456_v14 = vld [vmem:[#allocation2 + $0x2c] sm:$0xf]  ;;  %v1711_v15 = vld [vmem:[#allocation2 + $0x38] sm:$0xf0]  ;;  %v1706_v18 = vor.u32 %v2455_v9, %v1703_v11 }
  0x2a   :  { %303 = vmatpush.bf16.msra.mxu0 %v1734_v56  ;;  %v1685_v17 = vld [vmem:[#allocation2] sm:$0xf]  ;;  %v1710_v19 = vor.u32 %v2458_v13, %v1709_v12  ;;  %v2453_v20 = vld [vmem:[#allocation2 + $0xc] sm:$0xf0]  ;;  %v2451_v21 = vld [vmem:[#allocation2 + $0x4] sm:$0xf]  ;;  %v1714_v23 = vor.u32 %v2456_v14, %v1711_v15 }
  0x2b   :  { %316 = vmatpush.bf16.msra.mxu1 %v1738_v57  ;;  %v1687_v22 = vld [vmem:[#allocation2 + $0x10] sm:$0xf0]  ;;  %v1693_v24 = vld [vmem:[#allocation2 + $0x8] sm:$0xf]  ;;  %v2454_v25 = vld [vmem:[#allocation2 + $0x14] sm:$0xf0]  ;;  %v1686_v30 = vor.u32 %v2453_v20, %v1685_v17 }
  0x2c   :  { %329 = vmatpush.bf16.msra.mxu2 %v1742_v58  ;;  %342 = vmatpush.bf16.msra.mxu3 %v1746_v62  ;;  %v2452_v26 = vld [vmem:[#allocation2 + $0xc] sm:$0xf]  ;;  %v1695_v27 = vld [vmem:[#allocation2 + $0x18] sm:$0xf0]  ;;  %v1925_v28 = vld [vmem:[#allocation5 + $0xe0] sm:$0xf]  ;;  %v1690_v34 = vor.u32 %v2451_v21, %v1687_v22  ;;  %v1694_v35 = vor.u32 %v2454_v25, %v1693_v24 }
  0x2d   :  { %v2513_v29 = vld [vmem:[#allocation5 + $0xec] sm:$0xf0]  ;;  %v95_v31 = vld [vmem:[#allocation10] sm:$0xff]  ;;  %v1698_v36 = vor.u32 %v2452_v26, %v1695_v27  ;;  %s2814_s2 = smov [#allocation11]   ;;  %s1671_s21 = sshll.u32 %s2898_s5, 4  ;;  %s1672_s21 = int_to_ptr.hbm [resolvable:$true] %s1671_s21 }
  0x2e   :  { %304 = vmatpush.bf16.msra.mxu0 %v1718_v4  ;;  %v2053_v32 = vld [vmem:[#allocation5 + $0x1e0] sm:$0xf]  ;;  %v2545_v33 = vld [vmem:[#allocation5 + $0x1ec] sm:$0xf0]  ;;  %v1926_v37 = vor.u32 %v2513_v29, %v1925_v28  ;;  %v96_v41 = vpack.c.bf16 %v95_v31, %v95_v31  ;;  %s1669_s4 = sshll.u32 %s2814_s2, 4  ;;  %s1670_s4 = int_to_ptr.vmem [resolvable:$true] %s1669_s4 }
  0x2f   :  { %317 = vmatpush.bf16.msra.mxu1 %v1722_v5  ;;  %v1909_v38 = vld [vmem:[#allocation5 + $0xc0] sm:$0xf]  ;;  %v2577_v40 = vld [vmem:[#allocation5 + $0x2ec] sm:$0xf0]  ;;  %v2054_v42 = vor.u32 %v2545_v33, %v2053_v32 }
  0x30   :  { %330 = vmatpush.bf16.msra.mxu2 %v1726_v6  ;;  %343 = vmatpush.bf16.msra.mxu3 %v1730_v10  ;;  %v2181_v39 = vld [vmem:[#allocation5 + $0x2e0] sm:$0xf]  ;;  %v2509_v43 = vld [vmem:[#allocation5 + $0xcc] sm:$0xf0] }
  0x31   :  { %v2309_v44 = vld [vmem:[#allocation5 + $0x3e0] sm:$0xf]  ;;  %v2609_v45 = vld [vmem:[#allocation5 + $0x3ec] sm:$0xf0]  ;;  %v2182_v48 = vor.u32 %v2577_v40, %v2181_v39  ;;  %v1910_v49 = vor.u32 %v2509_v43, %v1909_v38 }
  0x32   :  { %305 = vmatpush.bf16.msra.mxu0 %v1702_v16  ;;  %v2037_v46 = vld [vmem:[#allocation5 + $0x1c0] sm:$0xf]  ;;  %v2541_v47 = vld [vmem:[#allocation5 + $0x1cc] sm:$0xf0]  ;;  %v2310_v50 = vor.u32 %v2609_v45, %v2309_v44 }
  0x33   :  { %318 = vmatpush.bf16.msra.mxu1 %v1706_v18  ;;  %v1893_v51 = vld [vmem:[#allocation5 + $0xa0] sm:$0xf]  ;;  %v2573_v53 = vld [vmem:[#allocation5 + $0x2cc] sm:$0xf0]  ;;  %v2038_v54 = vor.u32 %v2541_v47, %v2037_v46 }
  0x34   :  { %331 = vmatpush.bf16.msra.mxu2 %v1710_v19  ;;  %344 = vmatpush.bf16.msra.mxu3 %v1714_v23  ;;  %v2165_v52 = vld [vmem:[#allocation5 + $0x2c0] sm:$0xf]  ;;  %v2505_v55 = vld [vmem:[#allocation5 + $0xac] sm:$0xf0] }
  0x35   :  { %v2293_v56 = vld [vmem:[#allocation5 + $0x3c0] sm:$0xf]  ;;  %v2605_v57 = vld [vmem:[#allocation5 + $0x3cc] sm:$0xf0]  ;;  %v2166_v60 = vor.u32 %v2573_v53, %v2165_v52  ;;  %v1894_v61 = vor.u32 %v2505_v55, %v1893_v51 }
  0x36   :  { %306 = vmatpush.bf16.msra.mxu0 %v1686_v30  ;;  %v2021_v58 = vld [vmem:[#allocation5 + $0x1a0] sm:$0xf]  ;;  %v2537_v59 = vld [vmem:[#allocation5 + $0x1ac] sm:$0xf0]  ;;  %v2294_v62 = vor.u32 %v2605_v57, %v2293_v56  ;;  %v2511_v56 = vld [vmem:[#allocation5 + $0xe4] sm:$0xf] }
  0x37   :  { %319 = vmatpush.bf16.msra.mxu1 %v1690_v34  ;;  %v1877_v63 = vld [vmem:[#allocation5 + $0x80] sm:$0xf]  ;;  %v2569_v1 = vld [vmem:[#allocation5 + $0x2ac] sm:$0xf0]  ;;  %v2022_v2 = vor.u32 %v2537_v59, %v2021_v58  ;;  %v1927_v57 = vld [vmem:[#allocation5 + $0xf0] sm:$0xf0] }
  0x38   :  { %332 = vmatpush.bf16.msra.mxu2 %v1694_v35  ;;  %345 = vmatpush.bf16.msra.mxu3 %v1698_v36  ;;  %v2149_v0 = vld [vmem:[#allocation5 + $0x2a0] sm:$0xf]  ;;  %v2501_v3 = vld [vmem:[#allocation5 + $0x8c] sm:$0xf0]  ;;  %v2543_v58 = vld [vmem:[#allocation5 + $0x1e4] sm:$0xf] }
  0x39   :  { %307 = vmatmul.bf16.vlgmr.msra.gmra.mxu0 %v96_v41  ;;  %v2277_v4 = vld [vmem:[#allocation5 + $0x3a0] sm:$0xf]  ;;  %v2601_v5 = vld [vmem:[#allocation5 + $0x3ac] sm:$0xf0]  ;;  %v2150_v8 = vor.u32 %v2569_v1, %v2149_v0  ;;  %v1878_v9 = vor.u32 %v2501_v3, %v1877_v63  ;;  %v2055_v59 = vld [vmem:[#allocation5 + $0x1f0] sm:$0xf0] }
  0x3a   :  { %1138 = vmatpush.bf16.msrb.mxu0 %v1926_v37  ;;  %320 = vmatmul.bf16.vlgmr.msra.gmra.mxu1 %v96_v41  ;;  %v2005_v6 = vld [vmem:[#allocation5 + $0x180] sm:$0xf]  ;;  %v2533_v7 = vld [vmem:[#allocation5 + $0x18c] sm:$0xf0]  ;;  %v2278_v10 = vor.u32 %v2601_v5, %v2277_v4  ;;  %v2507_v63 = vld [vmem:[#allocation5 + $0xc4] sm:$0xf]  ;;  %v1930_v4 = vor.u32 %v2511_v56, %v1927_v57 }
  0x3b   :  { %1151 = vmatpush.bf16.msrb.mxu1 %v2054_v42  ;;  %333 = vmatmul.bf16.vlgmr.msra.gmra.mxu2 %v96_v41  ;;  %v1861_v11 = vld [vmem:[#allocation5 + $0x60] sm:$0xf]  ;;  %v2565_v13 = vld [vmem:[#allocation5 + $0x28c] sm:$0xf0]  ;;  %v2006_v14 = vor.u32 %v2533_v7, %v2005_v6  ;;  %v2575_v6 = vld [vmem:[#allocation5 + $0x2e4] sm:$0xf] }
  0x3c   :  { %346 = vmatmul.bf16.vlgmr.msra.gmra.mxu3 %v96_v41  ;;  %1164 = vmatpush.bf16.msrb.mxu2 %v2182_v48  ;;  %v2133_v12 = vld [vmem:[#allocation5 + $0x280] sm:$0xf]  ;;  %v2497_v15 = vld [vmem:[#allocation5 + $0x6c] sm:$0xf0]  ;;  %v2183_v7 = vld [vmem:[#allocation5 + $0x2f0] sm:$0xf0] }
  0x3d   :  { %1177 = vmatpush.bf16.msrb.mxu3 %v2310_v50  ;;  %v2261_v16 = vld [vmem:[#allocation5 + $0x380] sm:$0xf]  ;;  %v2597_v17 = vld [vmem:[#allocation5 + $0x38c] sm:$0xf0]  ;;  %v2134_v20 = vor.u32 %v2565_v13, %v2133_v12  ;;  %v1862_v21 = vor.u32 %v2497_v15, %v1861_v11  ;;  %v2311_v11 = vld [vmem:[#allocation5 + $0x3f0] sm:$0xf0] }
  0x3e   :  { %1139 = vmatpush.bf16.msrb.mxu0 %v1910_v49  ;;  %v1989_v18 = vld [vmem:[#allocation5 + $0x160] sm:$0xf]  ;;  %v2529_v19 = vld [vmem:[#allocation5 + $0x16c] sm:$0xf0]  ;;  %v2262_v22 = vor.u32 %v2597_v17, %v2261_v16  ;;  %v2539_v12 = vld [vmem:[#allocation5 + $0x1c4] sm:$0xf]  ;;  %v2186_v16 = vor.u32 %v2575_v6, %v2183_v7 }
  0x3f   :  { %1152 = vmatpush.bf16.msrb.mxu1 %v2038_v54  ;;  %v1845_v23 = vld [vmem:[#allocation5 + $0x40] sm:$0xf]  ;;  %v2561_v25 = vld [vmem:[#allocation5 + $0x26c] sm:$0xf0]  ;;  %v1990_v26 = vor.u32 %v2529_v19, %v1989_v18  ;;  %v2039_v13 = vld [vmem:[#allocation5 + $0x1d0] sm:$0xf0] }
  0x40   :  { %1165 = vmatpush.bf16.msrb.mxu2 %v2166_v60  ;;  %v2117_v24 = vld [vmem:[#allocation5 + $0x260] sm:$0xf]  ;;  %v2493_v27 = vld [vmem:[#allocation5 + $0x4c] sm:$0xf0]  ;;  %v2503_v19 = vld [vmem:[#allocation5 + $0xa4] sm:$0xf] }
  0x41   :  { %1178 = vmatpush.bf16.msrb.mxu3 %v2294_v62  ;;  %v2245_v28 = vld [vmem:[#allocation5 + $0x360] sm:$0xf]  ;;  %v2593_v29 = vld [vmem:[#allocation5 + $0x36c] sm:$0xf0]  ;;  %v2118_v32 = vor.u32 %v2561_v25, %v2117_v24  ;;  %v1846_v33 = vor.u32 %v2493_v27, %v1845_v23  ;;  %v1895_v23 = vld [vmem:[#allocation5 + $0xb0] sm:$0xf0] }
  0x42   :  { %1140 = vmatpush.bf16.msrb.mxu0 %v1894_v61  ;;  %v1973_v30 = vld [vmem:[#allocation5 + $0x140] sm:$0xf]  ;;  %v2525_v31 = vld [vmem:[#allocation5 + $0x14c] sm:$0xf0]  ;;  %v2246_v34 = vor.u32 %v2593_v29, %v2245_v28  ;;  %v2603_v24 = vld [vmem:[#allocation5 + $0x3c4] sm:$0xf]  ;;  %v1898_v29 = vor.u32 %v2503_v19, %v1895_v23 }
  0x43   :  { %1153 = vmatpush.bf16.msrb.mxu1 %v2022_v2  ;;  %v1829_v35 = vld [vmem:[#allocation5 + $0x20] sm:$0xf]  ;;  %v2557_v37 = vld [vmem:[#allocation5 + $0x24c] sm:$0xf0]  ;;  %v1974_v38 = vor.u32 %v2525_v31, %v1973_v30  ;;  %v2295_v25 = vld [vmem:[#allocation5 + $0x3d0] sm:$0xf0] }
  0x44   :  { %1166 = vmatpush.bf16.msrb.mxu2 %v2150_v8  ;;  %v2101_v36 = vld [vmem:[#allocation5 + $0x240] sm:$0xf]  ;;  %v2489_v39 = vld [vmem:[#allocation5 + $0x2c] sm:$0xf0]  ;;  %v2058_v8 = vor.u32 %v2543_v58, %v2055_v59  ;;  %v2023_v27 = vld [vmem:[#allocation5 + $0x1b0] sm:$0xf0]  ;;  %v2298_v30 = vor.u32 %v2603_v24, %v2295_v25 }
  0x45   :  { %1179 = vmatpush.bf16.msrb.mxu3 %v2278_v10  ;;  %v2229_v40 = vld [vmem:[#allocation5 + $0x340] sm:$0xf]  ;;  %v2589_v41 = vld [vmem:[#allocation5 + $0x34c] sm:$0xf0]  ;;  %v2102_v44 = vor.u32 %v2557_v37, %v2101_v36  ;;  %v1830_v46 = vor.u32 %v2489_v39, %v1829_v35  ;;  %v2607_v10 = vld [vmem:[#allocation5 + $0x3e4] sm:$0xf] }
  0x46   :  { %1141 = vmatpush.bf16.msrb.mxu0 %v1878_v9  ;;  %v1957_v42 = vld [vmem:[#allocation5 + $0x120] sm:$0xf]  ;;  %v2521_v43 = vld [vmem:[#allocation5 + $0x12c] sm:$0xf0]  ;;  %v2230_v47 = vor.u32 %v2589_v41, %v2229_v40  ;;  %v1911_v9 = vld [vmem:[#allocation5 + $0xd0] sm:$0xf0]  ;;  %v2314_v18 = vor.u32 %v2607_v10, %v2311_v11 }
  0x47   :  { %1154 = vmatpush.bf16.msrb.mxu1 %v2006_v14  ;;  %v1813_v45 = vld [vmem:[#allocation5] sm:$0xf]  ;;  %v2485_v48 = vld [vmem:[#allocation5 + $0xc] sm:$0xf0]  ;;  %v1958_v51 = vor.u32 %v2521_v43, %v1957_v42  ;;  %v1914_v17 = vor.u32 %v2507_v63, %v1911_v9  ;;  %v2499_v31 = vld [vmem:[#allocation5 + $0x84] sm:$0xf] }
  0x48   :  { %1167 = vmatpush.bf16.msrb.mxu2 %v2134_v20  ;;  %v2085_v49 = vld [vmem:[#allocation5 + $0x220] sm:$0xf]  ;;  %v2553_v50 = vld [vmem:[#allocation5 + $0x22c] sm:$0xf0]  ;;  %v1814_v61 = vor.u32 %v2485_v48, %v1813_v45  ;;  %v2571_v20 = vld [vmem:[#allocation5 + $0x2c4] sm:$0xf] }
  0x49   :  { %1180 = vmatpush.bf16.msrb.mxu3 %v2262_v22  ;;  %v1941_v52 = vld [vmem:[#allocation5 + $0x100] sm:$0xf]  ;;  %v2585_v54 = vld [vmem:[#allocation5 + $0x32c] sm:$0xf0]  ;;  %v2086_v60 = vor.u32 %v2553_v50, %v2085_v49  ;;  %v2042_v22 = vor.u32 %v2539_v12, %v2039_v13  ;;  %v1879_v35 = vld [vmem:[#allocation5 + $0x90] sm:$0xf0] }
  0x4a   :  { %1142 = vmatpush.bf16.msrb.mxu0 %v1862_v21  ;;  %v2213_v53 = vld [vmem:[#allocation5 + $0x320] sm:$0xf]  ;;  %v2517_v55 = vld [vmem:[#allocation5 + $0x10c] sm:$0xf0]  ;;  %v2167_v21 = vld [vmem:[#allocation5 + $0x2d0] sm:$0xf0]  ;;  %v1882_v41 = vor.u32 %v2499_v31, %v1879_v35 }
  0x4b   :  { %1155 = vmatpush.bf16.msrb.mxu1 %v1990_v26  ;;  %v2214_v62 = vor.u32 %v2585_v54, %v2213_v53  ;;  %v2069_v0 = vld [vmem:[#allocation5 + $0x200] sm:$0xf]  ;;  %v2549_v1 = vld [vmem:[#allocation5 + $0x20c] sm:$0xf0]  ;;  %v1942_v3 = vor.u32 %v2517_v55, %v1941_v52  ;;  %v2535_v26 = vld [vmem:[#allocation5 + $0x1a4] sm:$0xf]  ;;  %v2170_v28 = vor.u32 %v2571_v20, %v2167_v21 }
  0x4c   :  { %1168 = vmatpush.bf16.msrb.mxu2 %v2118_v32  ;;  %v2197_v2 = vld [vmem:[#allocation5 + $0x300] sm:$0xf]  ;;  %v2581_v5 = vld [vmem:[#allocation5 + $0x30c] sm:$0xf0]  ;;  %v2070_v14 = vor.u32 %v2549_v1, %v2069_v0  ;;  %v2567_v32 = vld [vmem:[#allocation5 + $0x2a4] sm:$0xf] }
  0x4d   :  { %1181 = vmatpush.bf16.msrb.mxu3 %v2246_v34  ;;  %v2198_v15 = vor.u32 %v2581_v5, %v2197_v2  ;;  %v2026_v34 = vor.u32 %v2535_v26, %v2023_v27  ;;  %v2599_v36 = vld [vmem:[#allocation5 + $0x3a4] sm:$0xf]  ;;  %v2279_v37 = vld [vmem:[#allocation5 + $0x3b0] sm:$0xf0] }
  0x4e   :  { %1143 = vmatpush.bf16.msrb.mxu0 %v1846_v33  ;;  %v2151_v33 = vld [vmem:[#allocation5 + $0x2b0] sm:$0xf0]  ;;  %v2282_v42 = vor.u32 %v2599_v36, %v2279_v37  ;;  %v2495_v43 = vld [vmem:[#allocation5 + $0x64] sm:$0xf] }
  0x4f   :  { %1156 = vmatpush.bf16.msrb.mxu1 %v1974_v38  ;;  %v2531_v38 = vld [vmem:[#allocation5 + $0x184] sm:$0xf]  ;;  %v2007_v39 = vld [vmem:[#allocation5 + $0x190] sm:$0xf0]  ;;  %v2154_v40 = vor.u32 %v2567_v32, %v2151_v33 }
  0x50   :  { %1169 = vmatpush.bf16.msrb.mxu2 %v2102_v44  ;;  %v2563_v44 = vld [vmem:[#allocation5 + $0x284] sm:$0xf]  ;;  %v2135_v45 = vld [vmem:[#allocation5 + $0x290] sm:$0xf0] }
  0x51   :  { %1182 = vmatpush.bf16.msrb.mxu3 %v2230_v47  ;;  %v1863_v47 = vld [vmem:[#allocation5 + $0x70] sm:$0xf0]  ;;  %v2595_v48 = vld [vmem:[#allocation5 + $0x384] sm:$0xf]  ;;  %v2138_v52 = vor.u32 %v2563_v44, %v2135_v45  ;;  %v2546_v44 = vld [vmem:[#allocation5 + $0x1f4] sm:$0xf0] }
  0x52   :  { %1144 = vmatpush.bf16.msrb.mxu0 %v1830_v46  ;;  %v2010_v46 = vor.u32 %v2531_v38, %v2007_v39  ;;  %v2263_v49 = vld [vmem:[#allocation5 + $0x390] sm:$0xf0]  ;;  %v2527_v50 = vld [vmem:[#allocation5 + $0x164] sm:$0xf]  ;;  %v1866_v53 = vor.u32 %v2495_v43, %v1863_v47  ;;  %v2061_v43 = vld [vmem:[#allocation5 + $0x1e8] sm:$0xf] }
  0x53   :  { %1157 = vmatpush.bf16.msrb.mxu1 %v1958_v51  ;;  %v1991_v51 = vld [vmem:[#allocation5 + $0x170] sm:$0xf0]  ;;  %v2266_v54 = vor.u32 %v2595_v48, %v2263_v49  ;;  %v2491_v56 = vld [vmem:[#allocation5 + $0x44] sm:$0xf] }
  0x54   :  { %1170 = vmatpush.bf16.msrb.mxu2 %v2086_v60  ;;  %v1994_v55 = vor.u32 %v2527_v50, %v1991_v51  ;;  %v1847_v57 = vld [vmem:[#allocation5 + $0x50] sm:$0xf0]  ;;  %v2523_v58 = vld [vmem:[#allocation5 + $0x144] sm:$0xf]  ;;  %v2062_v51 = vor.u32 %v2546_v44, %v2061_v43 }
  0x55   :  { %1183 = vmatpush.bf16.msrb.mxu3 %v2214_v62  ;;  %v1975_v59 = vld [vmem:[#allocation5 + $0x150] sm:$0xf0]  ;;  %v1850_v60 = vor.u32 %v2491_v56, %v1847_v57  ;;  %v2559_v62 = vld [vmem:[#allocation5 + $0x264] sm:$0xf]  ;;  %v2542_v56 = vld [vmem:[#allocation5 + $0x1d4] sm:$0xf0] }
  0x56   :  { %1145 = vmatpush.bf16.msrb.mxu0 %v1814_v61  ;;  %v1978_v61 = vor.u32 %v2523_v58, %v1975_v59  ;;  %v2119_v63 = vld [vmem:[#allocation5 + $0x270] sm:$0xf0]  ;;  %v2591_v0 = vld [vmem:[#allocation5 + $0x364] sm:$0xf] }
  0x57   :  { %1158 = vmatpush.bf16.msrb.mxu1 %v1942_v3  ;;  %v2122_v1 = vor.u32 %v2559_v62, %v2119_v63  ;;  %v2247_v2 = vld [vmem:[#allocation5 + $0x370] sm:$0xf0]  ;;  %v2519_v7 = vld [vmem:[#allocation5 + $0x124] sm:$0xf]  ;;  %v2189_v62 = vld [vmem:[#allocation5 + $0x2e8] sm:$0xf] }
  0x58   :  { %1171 = vmatpush.bf16.msrb.mxu2 %v2070_v14  ;;  %v2250_v3 = vor.u32 %v2591_v0, %v2247_v2  ;;  %v1831_v5 = vld [vmem:[#allocation5 + $0x30] sm:$0xf0]  ;;  %v2555_v10 = vld [vmem:[#allocation5 + $0x244] sm:$0xf]  ;;  %v2578_v63 = vld [vmem:[#allocation5 + $0x2f4] sm:$0xf0] }
  0x59   :  { %1184 = vmatpush.bf16.msrb.mxu3 %v2198_v15  ;;  %v2103_v11 = vld [vmem:[#allocation5 + $0x250] sm:$0xf0]  ;;  %v2587_v12 = vld [vmem:[#allocation5 + $0x344] sm:$0xf]  ;;  %v2317_v0 = vld [vmem:[#allocation5 + $0x3e8] sm:$0xf] }
  0x5a   :  { %1190 = vmatpush.bf16.msra.mxu0 %v1930_v4  ;;  %v2487_v4 = vld [vmem:[#allocation5 + $0x24] sm:$0xf]  ;;  %v2106_v13 = vor.u32 %v2555_v10, %v2103_v11  ;;  %v2231_v14 = vld [vmem:[#allocation5 + $0x350] sm:$0xf0]  ;;  %v2190_v11 = vor.u32 %v2578_v63, %v2189_v62  ;;  %v2490_v62 = vld [vmem:[#allocation5 + $0x34] sm:$0xf0] }
  0x5b   :  { %1203 = vmatpush.bf16.msra.mxu1 %v2058_v8  ;;  %v1834_v6 = vor.u32 %v2487_v4, %v1831_v5  ;;  %v1959_v8 = vld [vmem:[#allocation5 + $0x130] sm:$0xf0]  ;;  %v2234_v15 = vor.u32 %v2587_v12, %v2231_v14  ;;  %v2583_v25 = vld [vmem:[#allocation5 + $0x324] sm:$0xf]  ;;  %v2610_v4 = vld [vmem:[#allocation5 + $0x3f4] sm:$0xf0] }
  0x5c   :  { %1216 = vmatpush.bf16.msra.mxu2 %v2186_v16  ;;  %v1962_v9 = vor.u32 %v2519_v7, %v1959_v8  ;;  %v2483_v16 = vld [vmem:[#allocation5 + $0x4] sm:$0xf]  ;;  %v1943_v20 = vld [vmem:[#allocation5 + $0x110] sm:$0xf0]  ;;  %v1901_v5 = vld [vmem:[#allocation5 + $0xa8] sm:$0xf] }
  0x5d   :  { %1229 = vmatpush.bf16.msra.mxu3 %v2314_v18  ;;  %v2515_v18 = vld [vmem:[#allocation5 + $0x104] sm:$0xf]  ;;  %v2087_v23 = vld [vmem:[#allocation5 + $0x230] sm:$0xf0]  ;;  %v2029_v8 = vld [vmem:[#allocation5 + $0x1a8] sm:$0xf] }
  0x5e   :  { %1191 = vmatpush.bf16.msra.mxu0 %v1914_v17  ;;  %v1815_v17 = vld [vmem:[#allocation5 + $0x10] sm:$0xf0]  ;;  %v1946_v21 = vor.u32 %v2515_v18, %v1943_v20  ;;  %v2579_v31 = vld [vmem:[#allocation5 + $0x304] sm:$0xf]  ;;  %v2606_v20 = vld [vmem:[#allocation5 + $0x3d4] sm:$0xf0] }
  0x5f   :  { %1204 = vmatpush.bf16.msra.mxu1 %v2042_v22  ;;  %v1818_v19 = vor.u32 %v2483_v16, %v1815_v17  ;;  %v2551_v22 = vld [vmem:[#allocation5 + $0x224] sm:$0xf]  ;;  %v2215_v26 = vld [vmem:[#allocation5 + $0x330] sm:$0xf0]  ;;  %v2574_v16 = vld [vmem:[#allocation5 + $0x2d4] sm:$0xf0] }
  0x60   :  { %1217 = vmatpush.bf16.msra.mxu2 %v2170_v28  ;;  %v2090_v24 = vor.u32 %v2551_v22, %v2087_v23  ;;  %v2218_v27 = vor.u32 %v2583_v25, %v2215_v26  ;;  %v2547_v28 = vld [vmem:[#allocation5 + $0x204] sm:$0xf]  ;;  %v2199_v32 = vld [vmem:[#allocation5 + $0x310] sm:$0xf0]  ;;  %v2301_v17 = vld [vmem:[#allocation5 + $0x3c8] sm:$0xf] }
  0x61   :  { %1230 = vmatpush.bf16.msra.mxu3 %v2298_v30  ;;  %v2202_v33 = vor.u32 %v2579_v31, %v2199_v32  ;;  %v2502_v22 = vld [vmem:[#allocation5 + $0x94] sm:$0xf0]  ;;  %v2013_v23 = vld [vmem:[#allocation5 + $0x188] sm:$0xf] }
  0x62   :  { %1192 = vmatpush.bf16.msra.mxu0 %v1898_v29  ;;  %v2071_v29 = vld [vmem:[#allocation5 + $0x210] sm:$0xf0]  ;;  %v2570_v31 = vld [vmem:[#allocation5 + $0x2b4] sm:$0xf0]  ;;  %v1965_v63 = vld [vmem:[#allocation5 + $0x128] sm:$0xf] }
  0x63   :  { %1205 = vmatpush.bf16.msra.mxu1 %v2026_v34  ;;  %v2074_v30 = vor.u32 %v2547_v28, %v2071_v29  ;;  %v129_v34 = vld [vmem:[#allocation8] ss:$8 sm:$0xf]  ;;  %v2302_v28 = vor.u32 %v2606_v20, %v2301_v17  ;;  %v2544_v17 = vld [vmem:[#allocation5 + $0x1ec] sm:$0xf] }
  0x64   :  { %1218 = vmatpush.bf16.msra.mxu2 %v2154_v40  ;;  %v131_v35 = vperm.slane %v129_v34, 0  ;;  %v132_v36 = vperm.slane %v129_v34, 1  ;;  %v1933_v40 = vld [vmem:[#allocation5 + $0xe8] sm:$0xf]  ;;  %v133_v47 = vperm.slane %v129_v34, 2  ;;  %v134_v50 = vperm.slane %v129_v34, 3 }
  0x65   :  { %1231 = vmatpush.bf16.msra.mxu3 %v2282_v42  ;;  %v2602_v34 = vld [vmem:[#allocation5 + $0x3b4] sm:$0xf0] }
  0x66   :  { %1193 = vmatpush.bf16.msra.mxu0 %v1882_v41  ;;  %v2514_v41 = vld [vmem:[#allocation5 + $0xf4] sm:$0xf0] }
  0x67   :  { %1206 = vmatpush.bf16.msra.mxu1 %v2010_v46  ;;  %v1934_v48 = vor.u32 %v2514_v41, %v1933_v40  ;;  %v2141_v41 = vld [vmem:[#allocation5 + $0x288] sm:$0xf] }
  0x68   :  { %1219 = vmatpush.bf16.msra.mxu2 %v2138_v52  ;;  %v1917_v52 = vld [vmem:[#allocation5 + $0xc8] sm:$0xf] }
  0x69   :  { %1232 = vmatpush.bf16.msra.mxu3 %v2266_v54 }
  0x6a   :  { %1194 = vmatpush.bf16.msra.mxu0 %v1866_v53  ;;  %v2510_v53 = vld [vmem:[#allocation5 + $0xd4] sm:$0xf0] }
  0x6b   :  { %1207 = vmatpush.bf16.msra.mxu1 %v1994_v55  ;;  %v2045_v55 = vld [vmem:[#allocation5 + $0x1c8] sm:$0xf] }
  0x6c   :  { %1220 = vmatpush.bf16.msra.mxu2 %v2122_v1 }
  0x6d   :  { %1233 = vmatpush.bf16.msra.mxu3 %v2250_v3  ;;  %v2046_v3 = vor.u32 %v2542_v56, %v2045_v55  ;;  %v2125_v55 = vld [vmem:[#allocation5 + $0x268] sm:$0xf]  ;;  %v2562_v56 = vld [vmem:[#allocation5 + $0x274] sm:$0xf0] }
  0x6e   :  { %1195 = vmatpush.bf16.msra.mxu0 %v1850_v60 }
  0x6f   :  { %1208 = vmatpush.bf16.msra.mxu1 %v1978_v61  ;;  %v1918_v61 = vor.u32 %v2510_v53, %v1917_v52 }
  0x70   :  { %1221 = vmatpush.bf16.msra.mxu2 %v2106_v13  ;;  %v2318_v13 = vor.u32 %v2610_v4, %v2317_v0  ;;  %v2522_v0 = vld [vmem:[#allocation5 + $0x134] sm:$0xf0] }
  0x71   :  { %1234 = vmatpush.bf16.msra.mxu3 %v2234_v15  ;;  %v2173_v15 = vld [vmem:[#allocation5 + $0x2c8] sm:$0xf]  ;;  %v2558_v4 = vld [vmem:[#allocation5 + $0x254] sm:$0xf0] }
  0x72   :  { %1196 = vmatpush.bf16.msra.mxu0 %v1834_v6  ;;  %v2506_v6 = vld [vmem:[#allocation5 + $0xb4] sm:$0xf0]  ;;  %v2174_v26 = vor.u32 %v2574_v16, %v2173_v15  ;;  %v1935_v16 = vld [vmem:[#allocation5 + $0xf8] sm:$0xf0] }
  0x73   :  { %1209 = vmatpush.bf16.msra.mxu1 %v1962_v9  ;;  %v2538_v9 = vld [vmem:[#allocation5 + $0x1b4] sm:$0xf0]  ;;  %v1902_v14 = vor.u32 %v2506_v6, %v1901_v5  ;;  %v2237_v5 = vld [vmem:[#allocation5 + $0x348] sm:$0xf] }
  0x74   :  { %1222 = vmatpush.bf16.msra.mxu2 %v2090_v24  ;;  %v2534_v24 = vld [vmem:[#allocation5 + $0x194] sm:$0xf0] }
  0x75   :  { %1235 = vmatpush.bf16.msra.mxu3 %v2218_v27  ;;  %v2014_v32 = vor.u32 %v2534_v24, %v2013_v23 }
  0x76   :  { %1197 = vmatpush.bf16.msra.mxu0 %v1818_v19  ;;  %v2030_v19 = vor.u32 %v2538_v9, %v2029_v8  ;;  %v2590_v8 = vld [vmem:[#allocation5 + $0x354] sm:$0xf0]  ;;  %v1821_v9 = vld [vmem:[#allocation5 + $0x8] sm:$0xf] }
  0x77   :  { %1210 = vmatpush.bf16.msra.mxu1 %v1946_v21  ;;  %v1885_v21 = vld [vmem:[#allocation5 + $0x88] sm:$0xf]  ;;  %v2238_v20 = vor.u32 %v2590_v8, %v2237_v5  ;;  %v2287_v8 = vld [vmem:[#allocation5 + $0x3b8] sm:$0xf0] }
  0x78   :  { %1223 = vmatpush.bf16.msra.mxu2 %v2074_v30  ;;  %v1886_v29 = vor.u32 %v2502_v22, %v1885_v21  ;;  %v2157_v30 = vld [vmem:[#allocation5 + $0x2a8] sm:$0xf]  ;;  %v2554_v22 = vld [vmem:[#allocation5 + $0x234] sm:$0xf0] }
  0x79   :  { %1236 = vmatpush.bf16.msra.mxu3 %v2202_v33  ;;  %v2285_v33 = vld [vmem:[#allocation5 + $0x3a8] sm:$0xf] }
  0x7a   :  { %v2286_v40 = vor.u32 %v2602_v34, %v2285_v33  ;;  %v2093_v21 = vld [vmem:[#allocation5 + $0x228] sm:$0xf]  ;;  %v2047_v33 = vld [vmem:[#allocation5 + $0x1d8] sm:$0xf0] }
  0xb6   :  { %v308_v37 = vpop.f32.mrf.mxu0 }
  0xb7   :  { %v309_v38 = vadd.f32 %v308_v37, %v131_v35  ;;  %v321_v39 = vpop.f32.mrf.mxu1  ;;  %v1869_v35 = vld [vmem:[#allocation5 + $0x68] sm:$0xf] }
  0xb8   :  { %v322_v42 = vadd.f32 %v321_v39, %v132_v36  ;;  %v2498_v36 = vld [vmem:[#allocation5 + $0x74] sm:$0xf0]  ;;  %v1997_v37 = vld [vmem:[#allocation5 + $0x168] sm:$0xf]  ;;  %v2158_v39 = vor.u32 %v2570_v31, %v2157_v30  ;;  %v2094_v30 = vor.u32 %v2554_v22, %v2093_v21  ;;  %v1919_v31 = vld [vmem:[#allocation5 + $0xd8] sm:$0xf0] }
  0xb9   :  { %v351_v45 = vmax.f32 %v309_v38, 0.0  ;;  %v2530_v38 = vld [vmem:[#allocation5 + $0x174] sm:$0xf0]  ;;  %v1870_v43 = vor.u32 %v2498_v36, %v1869_v35  ;;  %v2077_v35 = vld [vmem:[#allocation5 + $0x208] sm:$0xf] }
  0xba   :  { %v352_v46 = vmax.f32 %v322_v42, 0.0  ;;  %v2566_v42 = vld [vmem:[#allocation5 + $0x294] sm:$0xf0]  ;;  %v1998_v44 = vor.u32 %v2530_v38, %v1997_v37  ;;  %v2205_v37 = vld [vmem:[#allocation5 + $0x308] sm:$0xf] }
  0xbb   :  { %v2860_v49 = vpack.c.bf16 %v351_v45, %v351_v45  ;;  %v2269_v45 = vld [vmem:[#allocation5 + $0x388] sm:$0xf]  ;;  %v2142_v52 = vor.u32 %v2566_v42, %v2141_v41  ;;  %v2550_v36 = vld [vmem:[#allocation5 + $0x214] sm:$0xf0]  ;;  %v2596_v21 = vld [vmem:[#allocation5 + $0x38c] sm:$0xf] }
  0xbc   :  { %v2862_v54 = vpack.c.bf16 %v352_v46, %v352_v46  ;;  %v2598_v46 = vld [vmem:[#allocation5 + $0x394] sm:$0xf0]  ;;  %v2271_v22 = vld [vmem:[#allocation5 + $0x398] sm:$0xf0] }
  0xbd   :  { %1146 = vmatmul.bf16.vlgmr.msrb.gmra.mxu0 %v2860_v49  ;;  %v2270_v53 = vor.u32 %v2598_v46, %v2269_v45  ;;  %v2582_v38 = vld [vmem:[#allocation5 + $0x314] sm:$0xf0]  ;;  %v2504_v45 = vld [vmem:[#allocation5 + $0xac] sm:$0xf]  ;;  %v2078_v46 = vor.u32 %v2550_v36, %v2077_v35  ;;  %v1839_v36 = vld [vmem:[#allocation5 + $0x38] sm:$0xf0] }
  0xbe   :  { %v334_v57 = vpop.f32.mrf.mxu2  ;;  %1159 = vmatmul.bf16.vlgmr.msrb.gmra.mxu1 %v2862_v54  ;;  %1242 = vmatpush.bf16.msrb.mxu0 %v1934_v48  ;;  %v310_v60 = vpop.f32.mrf.mxu0  ;;  %v2494_v48 = vld [vmem:[#allocation5 + $0x54] sm:$0xf0]  ;;  %v2488_v35 = vld [vmem:[#allocation5 + $0x2c] sm:$0xf] }
  0xbf   :  { %v335_v58 = vadd.f32 %v334_v57, %v133_v47  ;;  %v347_v59 = vpop.f32.mrf.mxu3  ;;  %1255 = vmatpush.bf16.msrb.mxu1 %v2062_v51  ;;  %v323_v2 = vpop.f32.mrf.mxu1  ;;  %v1853_v47 = vld [vmem:[#allocation5 + $0x48] sm:$0xf]  ;;  %v2526_v51 = vld [vmem:[#allocation5 + $0x154] sm:$0xf0] }
  0xc0   :  { %v348_v1 = vadd.f32 %v347_v59, %v134_v50  ;;  %v1981_v50 = vld [vmem:[#allocation5 + $0x148] sm:$0xf]  ;;  %v1854_v57 = vor.u32 %v2494_v48, %v1853_v47  ;;  %v2594_v60 = vld [vmem:[#allocation5 + $0x374] sm:$0xf0]  ;;  %v1903_v47 = vld [vmem:[#allocation5 + $0xb8] sm:$0xf0] }
  0xc1   :  { %v353_v7 = vmax.f32 %v335_v58, 0.0  ;;  %v1982_v58 = vor.u32 %v2526_v51, %v1981_v50  ;;  %v2253_v59 = vld [vmem:[#allocation5 + $0x368] sm:$0xf]  ;;  %v2536_v48 = vld [vmem:[#allocation5 + $0x1ac] sm:$0xf]  ;;  %v2206_v51 = vor.u32 %v2582_v38, %v2205_v37 }
  0xc2   :  { %v354_v10 = vmax.f32 %v348_v1, 0.0  ;;  %1243 = vmatpush.bf16.msrb.mxu0 %v1918_v61  ;;  %v1837_v61 = vld [vmem:[#allocation5 + $0x28] sm:$0xf]  ;;  %v2126_v1 = vor.u32 %v2562_v56, %v2125_v55  ;;  %v2254_v2 = vor.u32 %v2594_v60, %v2253_v59  ;;  %v2031_v50 = vld [vmem:[#allocation5 + $0x1b8] sm:$0xf0] }
  0xc3   :  { %v2866_v12 = vpack.c.bf16 %v353_v7, %v353_v7  ;;  %1256 = vmatpush.bf16.msrb.mxu1 %v2046_v3  ;;  %v2109_v3 = vld [vmem:[#allocation5 + $0x248] sm:$0xf]  ;;  %v1838_v6 = vor.u32 %v2490_v62, %v1837_v61  ;;  %v1966_v7 = vor.u32 %v2522_v0, %v1965_v63  ;;  %v2572_v55 = vld [vmem:[#allocation5 + $0x2cc] sm:$0xf]  ;;  %v2175_v56 = vld [vmem:[#allocation5 + $0x2d8] sm:$0xf0] }
  0xc4   :  { %v2868_v18 = vpack.c.bf16 %v354_v10, %v354_v10  ;;  %v2486_v10 = vld [vmem:[#allocation5 + $0x14] sm:$0xf0]  ;;  %v2110_v15 = vor.u32 %v2558_v4, %v2109_v3  ;;  %v2604_v59 = vld [vmem:[#allocation5 + $0x3cc] sm:$0xf]  ;;  %v2303_v60 = vld [vmem:[#allocation5 + $0x3d8] sm:$0xf0] }
  0xc5   :  { %1172 = vmatmul.bf16.vlgmr.msrb.gmra.mxu2 %v2866_v12  ;;  %v1822_v23 = vor.u32 %v2486_v10, %v1821_v9  ;;  %v2500_v61 = vld [vmem:[#allocation5 + $0x8c] sm:$0xf]  ;;  %v1887_v62 = vld [vmem:[#allocation5 + $0x98] sm:$0xf0] }
  0xc6   :  { %1185 = vmatmul.bf16.vlgmr.msrb.gmra.mxu3 %v2868_v18  ;;  %1268 = vmatpush.bf16.msrb.mxu2 %v2190_v11  ;;  %v336_v25 = vpop.f32.mrf.mxu2  ;;  %v1949_v11 = vld [vmem:[#allocation5 + $0x108] sm:$0xf]  ;;  %v2532_v63 = vld [vmem:[#allocation5 + $0x18c] sm:$0xf]  ;;  %v2015_v0 = vld [vmem:[#allocation5 + $0x198] sm:$0xf0]  ;;  %v1890_v5 = vor.u32 %v2500_v61, %v1887_v62 }
  0xc7   :  { %1281 = vmatpush.bf16.msrb.mxu3 %v2318_v13  ;;  %v349_v27 = vpop.f32.mrf.mxu3  ;;  %1244 = vmatpush.bf16.msrb.mxu0 %v1902_v14  ;;  %v2518_v13 = vld [vmem:[#allocation5 + $0x114] sm:$0xf0]  ;;  %v2512_v14 = vld [vmem:[#allocation5 + $0xec] sm:$0xf]  ;;  %v2221_v25 = vld [vmem:[#allocation5 + $0x328] sm:$0xf] }
  0xc8   :  { %1257 = vmatpush.bf16.msrb.mxu1 %v2030_v19  ;;  %v2063_v19 = vld [vmem:[#allocation5 + $0x1f8] sm:$0xf0]  ;;  %v1950_v24 = vor.u32 %v2518_v13, %v1949_v11  ;;  %v1938_v27 = vor.u32 %v2512_v14, %v1935_v16  ;;  %v2568_v3 = vld [vmem:[#allocation5 + $0x2ac] sm:$0xf] }
  0xc9   :  { %v2159_v4 = vld [vmem:[#allocation5 + $0x2b8] sm:$0xf0]  ;;  %v2496_v9 = vld [vmem:[#allocation5 + $0x6c] sm:$0xf] }
  0xca   :  { %1269 = vmatpush.bf16.msrb.mxu2 %v2174_v26  ;;  %v2586_v26 = vld [vmem:[#allocation5 + $0x334] sm:$0xf0]  ;;  %v1871_v10 = vld [vmem:[#allocation5 + $0x78] sm:$0xf0]  ;;  %v2528_v11 = vld [vmem:[#allocation5 + $0x16c] sm:$0xf]  ;;  %v2162_v14 = vor.u32 %v2568_v3, %v2159_v4 }
  0xcb   :  { %1282 = vmatpush.bf16.msrb.mxu3 %v2302_v28  ;;  %1245 = vmatpush.bf16.msrb.mxu0 %v1886_v29  ;;  %v2066_v28 = vor.u32 %v2544_v17, %v2063_v19  ;;  %v2508_v29 = vld [vmem:[#allocation5 + $0xcc] sm:$0xf]  ;;  %v2222_v34 = vor.u32 %v2586_v26, %v2221_v25  ;;  %v1999_v13 = vld [vmem:[#allocation5 + $0x178] sm:$0xf0]  ;;  %v1874_v19 = vor.u32 %v2496_v9, %v1871_v10  ;;  %v2617_v4 = vld [vmem:[#allocation7 + $0x30] sm:$0xff] }
  0xcc   :  { %1258 = vmatpush.bf16.msrb.mxu1 %v2014_v32  ;;  %v2540_v32 = vld [vmem:[#allocation5 + $0x1cc] sm:$0xf]  ;;  %v1922_v41 = vor.u32 %v2508_v29, %v1919_v31  ;;  %v2143_v17 = vld [vmem:[#allocation5 + $0x298] sm:$0xf0] }
  0xcd   :  { %1198 = vmatmul.bf16.vlgmr.msra.gmra.mxu0 %v2860_v49  ;;  %v2050_v42 = vor.u32 %v2540_v32, %v2047_v33  ;;  %v2564_v16 = vld [vmem:[#allocation5 + $0x28c] sm:$0xf]  ;;  %v1983_v26 = vld [vmem:[#allocation5 + $0x158] sm:$0xf0] }
  0xce   :  { %1270 = vmatpush.bf16.msrb.mxu2 %v2158_v39  ;;  %1211 = vmatmul.bf16.vlgmr.msra.gmra.mxu1 %v2862_v54  ;;  %v2576_v39 = vld [vmem:[#allocation5 + $0x2ec] sm:$0xf]  ;;  %v1967_v38 = vld [vmem:[#allocation5 + $0x138] sm:$0xf0] }
  0xcf   :  { %1283 = vmatpush.bf16.msrb.mxu3 %v2286_v40  ;;  %1246 = vmatpush.bf16.msrb.mxu0 %v1870_v43  ;;  %v2191_v40 = vld [vmem:[#allocation5 + $0x2f8] sm:$0xf0]  ;;  %v2608_v43 = vld [vmem:[#allocation5 + $0x3ec] sm:$0xf] }
  0xd0   :  { %1259 = vmatpush.bf16.msrb.mxu1 %v1998_v44  ;;  %v2319_v44 = vld [vmem:[#allocation5 + $0x3f8] sm:$0xf0]  ;;  %v2524_v25 = vld [vmem:[#allocation5 + $0x14c] sm:$0xf] }
  0xd1   :  { %v2560_v29 = vld [vmem:[#allocation5 + $0x26c] sm:$0xf]  ;;  %v1986_v32 = vor.u32 %v2524_v25, %v1983_v26  ;;  %v2618_v61 = vld [vmem:[#allocation7 + $0x38] sm:$0xff]  ;;  %v2619_v25 = vld [vmem:[#allocation7 + $0x40] sm:$0xff] }
  0xd2   :  { %1271 = vmatpush.bf16.msrb.mxu2 %v2142_v52  ;;  %v2194_v52 = vor.u32 %v2576_v39, %v2191_v40  ;;  %v2592_v33 = vld [vmem:[#allocation5 + $0x36c] sm:$0xf]  ;;  %v2207_v3 = vld [vmem:[#allocation5 + $0x318] sm:$0xf0]  ;;  %v2631_v26 = vld [vmem:[#allocation7 + $0xa0] sm:$0xff] }
  0xd3   :  { %1284 = vmatpush.bf16.msrb.mxu3 %v2270_v53  ;;  %1247 = vmatpush.bf16.msrb.mxu0 %v1854_v57  ;;  %v2322_v53 = vor.u32 %v2608_v43, %v2319_v44  ;;  %v1906_v57 = vor.u32 %v2504_v45, %v1903_v47  ;;  %v2520_v37 = vld [vmem:[#allocation5 + $0x12c] sm:$0xf]  ;;  %v1842_v43 = vor.u32 %v2488_v35, %v1839_v36  ;;  %v2626_v9 = vld [vmem:[#allocation7 + $0x78] sm:$0xff] }
  0xd4   :  { %1260 = vmatpush.bf16.msrb.mxu1 %v1982_v58  ;;  %v2034_v58 = vor.u32 %v2536_v48, %v2031_v50  ;;  %v1970_v44 = vor.u32 %v2520_v37, %v1967_v38  ;;  %v2588_v45 = vld [vmem:[#allocation5 + $0x34c] sm:$0xf]  ;;  %v1823_v48 = vld [vmem:[#allocation5 + $0x18] sm:$0xf0] }
  0xd5   :  { %1224 = vmatmul.bf16.vlgmr.msra.gmra.mxu2 %v2866_v12  ;;  %v2484_v47 = vld [vmem:[#allocation5 + $0xc] sm:$0xf]  ;;  %v2614_v10 = vld [vmem:[#allocation7 + $0x18] sm:$0xff] }
  0xd6   :  { %1237 = vmatmul.bf16.vlgmr.msra.gmra.mxu3 %v2868_v18  ;;  %1272 = vmatpush.bf16.msrb.mxu2 %v2126_v1  ;;  %v2178_v1 = vor.u32 %v2572_v55, %v2175_v56  ;;  %v2516_v50 = vld [vmem:[#allocation5 + $0x10c] sm:$0xf]  ;;  %v2095_v56 = vld [vmem:[#allocation5 + $0x238] sm:$0xf0] }
  0xd7   :  { %1285 = vmatpush.bf16.msrb.mxu3 %v2254_v2  ;;  %1248 = vmatpush.bf16.msrb.mxu0 %v1838_v6  ;;  %v2306_v2 = vor.u32 %v2604_v59, %v2303_v60  ;;  %v2018_v6 = vor.u32 %v2532_v63, %v2015_v0  ;;  %v2552_v55 = vld [vmem:[#allocation5 + $0x22c] sm:$0xf]  ;;  %v2223_v60 = vld [vmem:[#allocation5 + $0x338] sm:$0xf0] }
  0xd8   :  { %1261 = vmatpush.bf16.msrb.mxu1 %v1966_v7  ;;  %v2600_v7 = vld [vmem:[#allocation5 + $0x3ac] sm:$0xf]  ;;  %v2098_v62 = vor.u32 %v2552_v55, %v2095_v56 }
  0xd9   :  { %v2584_v59 = vld [vmem:[#allocation5 + $0x32c] sm:$0xf] }
  0xda   :  { %1273 = vmatpush.bf16.msrb.mxu2 %v2110_v15  ;;  %v2290_v15 = vor.u32 %v2600_v7, %v2287_v8  ;;  %v2226_v63 = vor.u32 %v2584_v59, %v2223_v60  ;;  %v2548_v0 = vld [vmem:[#allocation5 + $0x20c] sm:$0xf]  ;;  %v2615_v8 = vld [vmem:[#allocation7 + $0x20] sm:$0xff] }
  0xdb   :  { %1286 = vmatpush.bf16.msrb.mxu3 %v2238_v20  ;;  %1249 = vmatpush.bf16.msrb.mxu0 %v1822_v23  ;;  %v2002_v20 = vor.u32 %v2528_v11, %v1999_v13  ;;  %v2492_v23 = vld [vmem:[#allocation5 + $0x4c] sm:$0xf]  ;;  %v2613_v11 = vld [vmem:[#allocation7 + $0x10] sm:$0xff] }
  0xdc   :  { %1262 = vmatpush.bf16.msrb.mxu1 %v1950_v24  ;;  %v1855_v24 = vld [vmem:[#allocation5 + $0x58] sm:$0xf0]  ;;  %v2616_v7 = vld [vmem:[#allocation7 + $0x28] sm:$0xff] }
  0xdd   :  { %v1858_v31 = vor.u32 %v2492_v23, %v1855_v24  ;;  %v2624_v13 = vld [vmem:[#allocation7 + $0x68] sm:$0xff] }
  0xde   :  { %1274 = vmatpush.bf16.msrb.mxu2 %v2094_v30  ;;  %1250 = vmatmul.bf16.vlgmr.msrb.gmra.mxu0 %v2860_v49  ;;  %v2127_v30 = vld [vmem:[#allocation5 + $0x278] sm:$0xf0]  ;;  %v2628_v36 = vld [vmem:[#allocation7 + $0x88] sm:$0xff] }
  0xdf   :  { %1294 = vmatpush.bf16.msra.mxu0 %v1938_v27  ;;  %1287 = vmatpush.bf16.msrb.mxu3 %v2222_v34  ;;  %v2146_v27 = vor.u32 %v2564_v16, %v2143_v17  ;;  %v2255_v34 = vld [vmem:[#allocation5 + $0x378] sm:$0xf0]  ;;  %v2130_v39 = vor.u32 %v2560_v29, %v2127_v30  ;;  %v2621_v16 = vld [vmem:[#allocation7 + $0x50] sm:$0xff] }
  0xe0   :  { %1307 = vmatpush.bf16.msra.mxu1 %v2066_v28  ;;  %v2274_v28 = vor.u32 %v2596_v21, %v2271_v22  ;;  %v2258_v40 = vor.u32 %v2592_v33, %v2255_v34  ;;  %v2633_v17 = vld [vmem:[#allocation7 + $0xb0] sm:$0xff]  ;;  %v2632_v21 = vld [vmem:[#allocation7 + $0xa8] sm:$0xff] }
  0xe1   :  { %1263 = vmatmul.bf16.vlgmr.msrb.gmra.mxu1 %v2862_v54 }
  0xe2   :  { %1275 = vmatpush.bf16.msrb.mxu2 %v2078_v46  ;;  %v2239_v46 = vld [vmem:[#allocation5 + $0x358] sm:$0xf0] }
  0xe3   :  { %1295 = vmatpush.bf16.msra.mxu0 %v1922_v41  ;;  %1288 = vmatpush.bf16.msrb.mxu3 %v2206_v51  ;;  %v2556_v41 = vld [vmem:[#allocation5 + $0x24c] sm:$0xf]  ;;  %v1951_v51 = vld [vmem:[#allocation5 + $0x118] sm:$0xf0] }
  0xe4   :  { %1308 = vmatpush.bf16.msra.mxu1 %v2050_v42  ;;  %v2111_v42 = vld [vmem:[#allocation5 + $0x258] sm:$0xf0] }
  0xe5   :  { %1276 = vmatmul.bf16.vlgmr.msrb.gmra.mxu2 %v2866_v12 }
  0xe6   :  { %1320 = vmatpush.bf16.msra.mxu2 %v2194_v52  ;;  %1289 = vmatmul.bf16.vlgmr.msrb.gmra.mxu3 %v2868_v18  ;;  %v2114_v52 = vor.u32 %v2556_v41, %v2111_v42  ;;  %v2627_v41 = vld [vmem:[#allocation7 + $0x80] sm:$0xff]  ;;  %v2642_v42 = vld [vmem:[#allocation7 + $0xf8] sm:$0xff] }
  0xe7   :  { %1333 = vmatpush.bf16.msra.mxu3 %v2322_v53  ;;  %1296 = vmatpush.bf16.msra.mxu0 %v1906_v57  ;;  %v2242_v53 = vor.u32 %v2588_v45, %v2239_v46  ;;  %v1826_v57 = vor.u32 %v2484_v47, %v1823_v48  ;;  %v2641_v47 = vld [vmem:[#allocation7 + $0xf0] sm:$0xff] }
  0xe8   :  { %1309 = vmatpush.bf16.msra.mxu1 %v2034_v58  ;;  %v1954_v58 = vor.u32 %v2516_v50, %v1951_v51 }
  0xea   :  { %1321 = vmatpush.bf16.msra.mxu2 %v2178_v1  ;;  %v2079_v1 = vld [vmem:[#allocation5 + $0x218] sm:$0xf0] }
  0xeb   :  { %1334 = vmatpush.bf16.msra.mxu3 %v2306_v2  ;;  %1297 = vmatpush.bf16.msra.mxu0 %v1890_v5  ;;  %v2580_v2 = vld [vmem:[#allocation5 + $0x30c] sm:$0xf]  ;;  %v2082_v5 = vor.u32 %v2548_v0, %v2079_v1 }
  0xec   :  { %1310 = vmatpush.bf16.msra.mxu1 %v2018_v6  ;;  %v2210_v6 = vor.u32 %v2580_v2, %v2207_v3 }
  0xee   :  { %1322 = vmatpush.bf16.msra.mxu2 %v2162_v14  ;;  %v2611_v14 = vld [vmem:[#allocation7] sm:$0xff] }
  0xef   :  { %1335 = vmatpush.bf16.msra.mxu3 %v2290_v15  ;;  %1298 = vmatpush.bf16.msra.mxu0 %v1874_v19  ;;  %v2623_v15 = vld [vmem:[#allocation7 + $0x60] sm:$0xff] }
  0xf0   :  { %1311 = vmatpush.bf16.msra.mxu1 %v2002_v20  ;;  %v2884_v19 = vld [vmem:[#allocation8 + $0x1] ss:$8 sm:$0xf] }
  0xf1   :  { %v2620_v20 = vld [vmem:[#allocation7 + $0x48] sm:$0xff]  ;;  %v490_v24 = vperm.slane %v2884_v19, 0  ;;  %v492_v1 = vperm.slane %v2884_v19, 2 }
  0xf2   :  { %1323 = vmatpush.bf16.msra.mxu2 %v2146_v27 }
  0xf3   :  { %1336 = vmatpush.bf16.msra.mxu3 %v2274_v28  ;;  %1299 = vmatpush.bf16.msra.mxu0 %v1858_v31  ;;  %v2630_v28 = vld [vmem:[#allocation7 + $0x98] sm:$0xff] }
  0xf4   :  { %1312 = vmatpush.bf16.msra.mxu1 %v1986_v32  ;;  %v2629_v32 = vld [vmem:[#allocation7 + $0x90] sm:$0xff] }
  0xf6   :  { %1324 = vmatpush.bf16.msra.mxu2 %v2130_v39 }
  0xf7   :  { %1337 = vmatpush.bf16.msra.mxu3 %v2258_v40  ;;  %1300 = vmatpush.bf16.msra.mxu0 %v1842_v43 }
  0xf8   :  { %1313 = vmatpush.bf16.msra.mxu1 %v1970_v44  ;;  %v491_v44 = vperm.slane %v2884_v19, 1 }
  0xfa   :  { %1325 = vmatpush.bf16.msra.mxu2 %v2114_v52  ;;  %v2640_v52 = vld [vmem:[#allocation7 + $0xe8] sm:$0xff] }
  0xfb   :  { %1338 = vmatpush.bf16.msra.mxu3 %v2242_v53  ;;  %1301 = vmatpush.bf16.msra.mxu0 %v1826_v57 }
  0xfc   :  { %1314 = vmatpush.bf16.msra.mxu1 %v1954_v58  ;;  %v2639_v58 = vld [vmem:[#allocation7 + $0xe0] sm:$0xff] }
  0xfe   :  { %1326 = vmatpush.bf16.msra.mxu2 %v2098_v62  ;;  %1302 = vmatmul.bf16.vlgmr.msra.gmra.mxu0 %v2860_v49  ;;  %v2625_v49 = vld [vmem:[#allocation7 + $0x70] sm:$0xff] }
  0xff   :  { %1611 = vmatpush.bf16.msrb.mxu0 %v2618_v61  ;;  %1339 = vmatpush.bf16.msra.mxu3 %v2226_v63  ;;  %v2638_v61 = vld [vmem:[#allocation7 + $0xd8] sm:$0xff] }
 0x100   :  { %1315 = vmatmul.bf16.vlgmr.msra.gmra.mxu1 %v2862_v54  ;;  %v2612_v54 = vld [vmem:[#allocation7 + $0x8] sm:$0xff] }
 0x101   :  { %1624 = vmatpush.bf16.msrb.mxu1 %v2626_v9 }
 0x102   :  { %1327 = vmatpush.bf16.msra.mxu2 %v2082_v5 }
 0x103   :  { %1612 = vmatpush.bf16.msrb.mxu0 %v2617_v4  ;;  %1340 = vmatpush.bf16.msra.mxu3 %v2210_v6  ;;  %v2637_v4 = vld [vmem:[#allocation7 + $0xd0] sm:$0xff] }
 0x105   :  { %1328 = vmatmul.bf16.vlgmr.msra.gmra.mxu2 %v2866_v12  ;;  %1625 = vmatpush.bf16.msrb.mxu1 %v2625_v49  ;;  %v2622_v12 = vld [vmem:[#allocation7 + $0x58] sm:$0xff] }
 0x106   :  { %1341 = vmatmul.bf16.vlgmr.msra.gmra.mxu3 %v2868_v18  ;;  %v2634_v18 = vld [vmem:[#allocation7 + $0xb8] sm:$0xff] }
 0x107   :  { %1613 = vmatpush.bf16.msrb.mxu0 %v2616_v7  ;;  %1637 = vmatpush.bf16.msrb.mxu2 %v2634_v18 }
 0x108   :  { %1650 = vmatpush.bf16.msrb.mxu3 %v2642_v42 }
 0x109   :  { %1626 = vmatpush.bf16.msrb.mxu1 %v2624_v13 }
 0x10b   :  { %1614 = vmatpush.bf16.msrb.mxu0 %v2615_v8  ;;  %1638 = vmatpush.bf16.msrb.mxu2 %v2633_v17  ;;  %v2636_v8 = vld [vmem:[#allocation7 + $0xc8] sm:$0xff] }
 0x10c   :  { %1651 = vmatpush.bf16.msrb.mxu3 %v2641_v47 }
 0x10d   :  { %1627 = vmatpush.bf16.msrb.mxu1 %v2623_v15 }
 0x10f   :  { %1615 = vmatpush.bf16.msrb.mxu0 %v2614_v10  ;;  %1639 = vmatpush.bf16.msrb.mxu2 %v2632_v21 }
 0x110   :  { %1652 = vmatpush.bf16.msrb.mxu3 %v2640_v52 }
 0x111   :  { %1628 = vmatpush.bf16.msrb.mxu1 %v2622_v12 }
 0x113   :  { %1616 = vmatpush.bf16.msrb.mxu0 %v2613_v11  ;;  %1640 = vmatpush.bf16.msrb.mxu2 %v2631_v26 }
 0x114   :  { %1653 = vmatpush.bf16.msrb.mxu3 %v2639_v58 }
 0x115   :  { %1629 = vmatpush.bf16.msrb.mxu1 %v2621_v16 }
 0x117   :  { %1617 = vmatpush.bf16.msrb.mxu0 %v2612_v54  ;;  %1641 = vmatpush.bf16.msrb.mxu2 %v2630_v28  ;;  %v2635_v54 = vld [vmem:[#allocation7 + $0xc0] sm:$0xff] }
 0x118   :  { %1654 = vmatpush.bf16.msrb.mxu3 %v2638_v61 }
 0x119   :  { %1630 = vmatpush.bf16.msrb.mxu1 %v2620_v20  ;;  %v493_v20 = vperm.slane %v2884_v19, 3  ;;  %v1418_v19 = vld [vmem:[#allocation8 + $0x2] ss:$0 sm:$0xff] }
 0x11b   :  { %1618 = vmatpush.bf16.msrb.mxu0 %v2611_v14  ;;  %1642 = vmatpush.bf16.msrb.mxu2 %v2629_v32 }
 0x11c   :  { %1655 = vmatpush.bf16.msrb.mxu3 %v2637_v4 }
 0x11d   :  { %1631 = vmatpush.bf16.msrb.mxu1 %v2619_v25 }
 0x11f   :  { %1643 = vmatpush.bf16.msrb.mxu2 %v2628_v36 }
 0x120   :  { %1656 = vmatpush.bf16.msrb.mxu3 %v2636_v8 }
 0x123   :  { %1644 = vmatpush.bf16.msrb.mxu2 %v2627_v41 }
 0x124   :  { %1657 = vmatpush.bf16.msrb.mxu3 %v2635_v54 }
 0x13a   :  { %v1147_v22 = vpop.f32.mrf.mxu0 }
 0x13b   :  { %v1160_v23 = vpop.f32.mrf.mxu1  ;;  %v1148_v27 = vadd.f32 %v1147_v22, %v490_v24 }
 0x13d   :  { %v1161_v31 = vadd.f32 %v1160_v23, %v1148_v27 }
 0x142   :  { %v1149_v29 = vpop.f32.mrf.mxu0 }
 0x143   :  { %v1162_v30 = vpop.f32.mrf.mxu1 }
 0x148   :  { %v1173_v33 = vpop.f32.mrf.mxu2 }
 0x149   :  { %v1174_v34 = vadd.f32 %v1173_v33, %v1161_v31  ;;  %v1186_v35 = vpop.f32.mrf.mxu3 }
 0x14a   :  { %v1199_v38 = vpop.f32.mrf.mxu0 }
 0x14b   :  { %v1187_v37 = vadd.f32 %v1186_v35, %v1174_v34  ;;  %v1212_v39 = vpop.f32.mrf.mxu1  ;;  %v1200_v48 = vadd.f32 %v1199_v38, %v491_v44 }
 0x14d   :  { %v1346_v40 = vmax.f32 %v1187_v37, 0.0  ;;  %v1213_v53 = vadd.f32 %v1212_v39, %v1200_v48 }
 0x14f   :  { %v1350_v43 = vpack.c.bf16 %v1346_v40, %v1346_v40 }
 0x150   :  { %v1175_v45 = vpop.f32.mrf.mxu2 }
 0x151   :  { %v1188_v46 = vpop.f32.mrf.mxu3  ;;  %1619 = vmatmul.bf16.vlgmr.msrb.gmra.mxu0 %v1350_v43 }
 0x152   :  { %v1201_v50 = vpop.f32.mrf.mxu0 }
 0x153   :  { %v1214_v51 = vpop.f32.mrf.mxu1 }
 0x158   :  { %v1225_v55 = vpop.f32.mrf.mxu2 }
 0x159   :  { %v1226_v56 = vadd.f32 %v1225_v55, %v1213_v53  ;;  %v1238_v57 = vpop.f32.mrf.mxu3 }
 0x15b   :  { %v1239_v59 = vadd.f32 %v1238_v57, %v1226_v56  ;;  %v1251_v60 = vpop.f32.mrf.mxu0 }
 0x15c   :  { %v1252_v5 = vadd.f32 %v1251_v60, %v492_v1 }
 0x15d   :  { %v1347_v62 = vmax.f32 %v1239_v59, 0.0 }
 0x15e   :  { %v1264_v63 = vpop.f32.mrf.mxu1 }
 0x15f   :  { %v1351_v0 = vpack.c.bf16 %v1347_v62, %v1347_v62  ;;  %v1265_v9 = vadd.f32 %v1264_v63, %v1252_v5 }
 0x160   :  { %v1227_v2 = vpop.f32.mrf.mxu2 }
 0x161   :  { %v1240_v3 = vpop.f32.mrf.mxu3  ;;  %1632 = vmatmul.bf16.vlgmr.msrb.gmra.mxu1 %v1351_v0 }
 0x163   :  { %v1253_v6 = vpop.f32.mrf.mxu0 }
 0x166   :  { %v1266_v7 = vpop.f32.mrf.mxu1 }
 0x168   :  { %v1277_v10 = vpop.f32.mrf.mxu2 }
 0x169   :  { %v1290_v11 = vpop.f32.mrf.mxu3  ;;  %v1278_v49 = vadd.f32 %v1277_v10, %v1265_v9 }
 0x16b   :  { %v1291_v13 = vadd.f32 %v1290_v11, %v1278_v49 }
 0x16d   :  { %v1348_v14 = vmax.f32 %v1291_v13, 0.0 }
 0x16f   :  { %v1352_v15 = vpack.c.bf16 %v1348_v14, %v1348_v14 }
 0x170   :  { %v1279_v12 = vpop.f32.mrf.mxu2 }
 0x171   :  { %v1292_v18 = vpop.f32.mrf.mxu3  ;;  %1645 = vmatmul.bf16.vlgmr.msrb.gmra.mxu2 %v1352_v15 }
 0x17b   :  { %v1303_v16 = vpop.f32.mrf.mxu0 }
 0x17c   :  { %v1304_v21 = vadd.f32 %v1303_v16, %v493_v20 }
 0x17d   :  { %v1316_v17 = vpop.f32.mrf.mxu1 }
 0x17e   :  { %v1317_v24 = vadd.f32 %v1316_v17, %v1304_v21 }
 0x183   :  { %v1305_v22 = vpop.f32.mrf.mxu0 }
 0x185   :  { %v1318_v23 = vpop.f32.mrf.mxu1 }
 0x188   :  { %v1329_v25 = vpop.f32.mrf.mxu2 }
 0x189   :  { %v1330_v26 = vadd.f32 %v1329_v25, %v1317_v24  ;;  %v1342_v27 = vpop.f32.mrf.mxu3 }
 0x18b   :  { %v1343_v28 = vadd.f32 %v1342_v27, %v1330_v26 }
 0x18d   :  { %v1349_v29 = vmax.f32 %v1343_v28, 0.0 }
 0x18f   :  { %v1353_v30 = vpack.c.bf16 %v1349_v29, %v1349_v29 }
 0x190   :  { %v1331_v31 = vpop.f32.mrf.mxu2 }
 0x191   :  { %v1344_v32 = vpop.f32.mrf.mxu3  ;;  %1658 = vmatmul.bf16.vlgmr.msrb.gmra.mxu3 %v1353_v30 }
 0x1ce   :  { %v1620_v33 = vpop.f32.mrf.mxu0 }
 0x1cf   :  { %v1621_v39 = vadd.f32 %v1620_v33, %v1418_v19 }
 0x1d6   :  { %v1622_v34 = vpop.f32.mrf.mxu0 }
 0x1de   :  { %v1633_v35 = vpop.f32.mrf.mxu1 }
 0x1df   :  { %v1634_v40 = vadd.f32 %v1633_v35, %v1621_v39 }
 0x1e6   :  { %v1635_v36 = vpop.f32.mrf.mxu1 }
 0x1f4   :  { %v1646_v37 = vpop.f32.mrf.mxu2 }
 0x1f5   :  { %v1647_v41 = vadd.f32 %v1646_v37, %v1634_v40 }
 0x1fc   :  { %v1648_v38 = vpop.f32.mrf.mxu2 }
 0x214   :  { %v1659_v42 = vpop.f32.mrf.mxu3 }
 0x215   :  { %v1660_v43 = vadd.f32 %v1659_v42, %v1647_v41 }
 0x217   :  { %1663 = vst [vmem:[#allocation11] sm:$0xff] %v1660_v43 }
 0x218   :  { %1674 = dma.vmem_to_hbm [thread:$0]  %s1670_s4, 128, %s1672_s21, [#allocation4]  }
 0x21c   :  { %v1661_v44 = vpop.f32.mrf.mxu3 }
 0x21d   :  { %2803 = dma.done.wait [#allocation4], 128  }
 0x21e   :  { %2804 = vsyncadd [#allocation4], 4294967168 }
 0x21f   :  { %1679 = vsyncpa [#allocation3], 1 }
 0x220   :  { %1680 = vsyncpa [#allocation6], 1 }
 0x221   :  { %1681 = vsyncpa [#allocation9], 1 }
 0x222   :  { %1682 = vsyncpa [#allocation4], 1 }

</bundles_post_ra>
